<compile_context>
chip_gen: v5e
topology: v5e:2x2
jax: 0.10.0
libtpu: 0.0.40
codegen_flags: <defaults>
</compile_context>

<pallas_src>
import functools

import jax
import jax.numpy as jnp
import numpy as np
from jax import lax
from jax.experimental import pallas as pl
from jax.experimental.pallas import tpu as pltpu


# ---------------------------------------------------------------------------
# Pallas kernel: whole forward pass in one invocation (grid=(1,))
# ---------------------------------------------------------------------------
def _phase_gru_kernel(x_ref, wih_ref, whh_ref, bgi_ref, bhn_ref, wc_ref, bc_ref,
                      out_ref, *, B, T, Hp):
    # ---- Hoisted input projection for ALL timesteps: one big MXU matmul.
    # x_ref is time-major (T*B, D); b_ih + b_hh(r,z) are pre-folded into bgi.
    gi = (jnp.dot(x_ref[...], wih_ref[...], preferred_element_type=jnp.float32)
          + bgi_ref[...])                                   # (T*B, 3Hp), SSA value

    whh = whh_ref[...]                                      # (Hp, 3Hp)
    bhn = jnp.broadcast_to(bhn_ref[...], (B, Hp))           # hoisted: broadcast once

    # ---- Serial recurrence. T is small and static: fully unrolled so the
    #      scheduler sees the whole dependence chain; only gh depends on h.
    h = jnp.zeros((B, Hp), jnp.float32)
    hs = []
    for t in range(T):
        gi_t = gi[t * B:(t + 1) * B, :]                     # static slice, off chain
        gh = jnp.dot(h, whh, preferred_element_type=jnp.float32)      # (B, 3Hp)
        # r|z combined: one sigmoid over a lane-aligned 2*Hp slice, split at 128.
        rz = jax.nn.sigmoid(gi_t[:, :2 * Hp] + gh[:, :2 * Hp])
        r = rz[:, :Hp]                                      # lane offset 0
        z = rz[:, Hp:]                                      # lane offset Hp (=128)
        n = jnp.tanh(gi_t[:, 2 * Hp:] + r * (gh[:, 2 * Hp:] + bhn))
        h = n + z * (h - n)                                 # == (1 - z) * n + z * h
        hs.append(h)

    # ---- Classifier over all timesteps at once (off the recurrence path).
    h_all = jnp.concatenate(hs, axis=0)                     # (T*B, Hp) register stack
    out_ref[...] = (jnp.dot(h_all, wc_ref[...], preferred_element_type=jnp.float32)
                    + bc_ref[...])                          # (T*B, C)


# ---------------------------------------------------------------------------
# Wrapper: batch_first in / batch_first out, PyTorch-style parameters
# ---------------------------------------------------------------------------
def phase_gru_forward(x, params):
    """x: (B, T, D) float32 (batch_first, like PyTorch). Returns (B, T, C)."""
    B, T, D = x.shape
    w_ih, w_hh = params["w_ih"], params["w_hh"]     # (3H, D), (3H, H)
    b_ih, b_hh = params["b_ih"], params["b_hh"]     # (3H,), (3H,)
    w_c, b_c = params["w_c"], params["b_c"]         # (C, H), (C,)
    H = w_hh.shape[1]
    C = w_c.shape[0]
    Hp = ((H + 127) // 128) * 128                   # lane-align each gate block

    def pad_gate_cols(w_t):                         # (rows, 3H) -> (rows, 3Hp)
        rows = w_t.shape[0]
        return jnp.pad(w_t.reshape(rows, 3, H),
                       ((0, 0), (0, 0), (0, Hp - H))).reshape(rows, 3 * Hp)

    # W_ih^T with zero-padded per-gate columns: (D, 3Hp)
    wih_p = pad_gate_cols(w_ih.T)
    # W_hh^T: pad per-gate columns AND pad the contraction rows (padded hidden
    # units contribute exactly zero): (Hp, 3Hp)
    whh_p = jnp.pad(pad_gate_cols(w_hh.T), ((0, Hp - H), (0, 0)))
    # Fold biases: b_ih fully + the r/z part of b_hh onto the hoisted projection;
    # only the n-gate hidden bias b_hn stays inside the recurrence
    # (PyTorch: n = tanh(W_in x + b_in + r * (W_hn h + b_hn))).
    b_gi = b_ih + jnp.concatenate([b_hh[:2 * H], jnp.zeros((H,), b_hh.dtype)])
    bgi_p = pad_gate_cols(b_gi[None, :])                            # (1, 3Hp)
    bhn_p = jnp.pad(b_hh[2 * H:][None, :], ((0, 0), (0, Hp - H)))   # (1, Hp)
    # Classifier: padded hidden rows are zero so they contribute nothing.
    wc_p = jnp.pad(w_c.T, ((0, Hp - H), (0, 0)))                    # (Hp, C)
    bc_p = b_c[None, :]                                             # (1, C)

    # Time-major 2-D input so each timestep is a contiguous row block; these
    # reshapes/transposes are plain-JAX (HBM-side), not in-kernel copies.
    x2d = jnp.transpose(x, (1, 0, 2)).reshape(T * B, D)

    kernel = functools.partial(_phase_gru_kernel, B=B, T=T, Hp=Hp)
    out2d = pl.pallas_call(
        kernel,
        out_shape=jax.ShapeDtypeStruct((T * B, C), jnp.float32),
        grid_spec=pltpu.PrefetchScalarGridSpec(
            num_scalar_prefetch=0,
            grid=(1,),                                  # single step; loop is in-kernel
            in_specs=[
                pl.BlockSpec((T * B, D), lambda i: (0, 0)),      # x, time-major
                pl.BlockSpec((D, 3 * Hp), lambda i: (0, 0)),     # W_ih^T (gate-padded)
                pl.BlockSpec((Hp, 3 * Hp), lambda i: (0, 0)),    # W_hh^T (gate-padded)
                pl.BlockSpec((1, 3 * Hp), lambda i: (0, 0)),     # folded input bias
                pl.BlockSpec((1, Hp), lambda i: (0, 0)),         # b_hn
                pl.BlockSpec((Hp, C), lambda i: (0, 0)),         # classifier W^T
                pl.BlockSpec((1, C), lambda i: (0, 0)),          # classifier bias
            ],
            out_specs=pl.BlockSpec((T * B, C), lambda i: (0, 0)),
        ),
        compiler_params=pltpu.CompilerParams(
            dimension_semantics=("arbitrary",)),
    )(x2d, wih_p, whh_p, bgi_p, bhn_p, wc_p, bc_p)

    # Back to batch_first: (T*B, C) -> (T, B, C) -> (B, T, C).
    return jnp.transpose(out2d.reshape(T, B, C), (1, 0, 2))


# ---------------------------------------------------------------------------
# Pure-JAX reference (PyTorch nn.GRU + nn.Linear semantics) for verification
# ---------------------------------------------------------------------------
def phase_gru_reference(x, params):
    w_ih, w_hh = params["w_ih"], params["w_hh"]
    b_ih, b_hh = params["b_ih"], params["b_hh"]
    w_c, b_c = params["w_c"], params["b_c"]
    H = w_hh.shape[1]

    def step(h, x_t):
        gi = x_t @ w_ih.T + b_ih
        gh = h @ w_hh.T + b_hh
        r = jax.nn.sigmoid(gi[:, :H] + gh[:, :H])
        z = jax.nn.sigmoid(gi[:, H:2 * H] + gh[:, H:2 * H])
        n = jnp.tanh(gi[:, 2 * H:] + r * gh[:, 2 * H:])
        h_new = (1.0 - z) * n + z * h
        return h_new, h_new

    B = x.shape[0]
    h0 = jnp.zeros((B, H), jnp.float32)
    _, hs = lax.scan(step, h0, jnp.transpose(x, (1, 0, 2)))   # (T, B, H)
    out = hs @ w_c.T + b_c
    return jnp.transpose(out, (1, 0, 2))                      # (B, T, C)


# ---------------------------------------------------------------------------
# Deterministic parameter init (shapes follow nn.GRU / nn.Linear)
# ---------------------------------------------------------------------------
def init_params(key, input_dim, hidden_dim, num_classes):
    ks = jax.random.split(key, 6)
    s = 1.0 / np.sqrt(hidden_dim)
    return {
        "w_ih": jax.random.uniform(ks[0], (3 * hidden_dim, input_dim), jnp.float32, -s, s),
        "w_hh": jax.random.uniform(ks[1], (3 * hidden_dim, hidden_dim), jnp.float32, -s, s),
        "b_ih": jax.random.uniform(ks[2], (3 * hidden_dim,), jnp.float32, -s, s),
        "b_hh": jax.random.uniform(ks[3], (3 * hidden_dim,), jnp.float32, -s, s),
        "w_c": jax.random.uniform(ks[4], (num_classes, hidden_dim), jnp.float32, -s, s),
        "b_c": jax.random.uniform(ks[5], (num_classes,), jnp.float32, -s, s),
    }


if __name__ == "__main__":
    B, T, D, H, C = 2, 8, 32, 32, 7   # small shapes consistent with the module

    key = jax.random.PRNGKey(0)
    k_x, k_p = jax.random.split(key)
    x = jax.random.normal(k_x, (B, T, D), jnp.float32)
    params = init_params(k_p, D, H, C)

    out = phase_gru_forward(x, params)
    out = jax.block_until_ready(out)

    ref = phase_gru_reference(x, params)
    np.testing.assert_allclose(np.asarray(out), np.asarray(ref), rtol=1e-5, atol=1e-5)

    print("KERNEL_OK")
</pallas_src>

<mosaic_0001>
module attributes {stable_mosaic.version = 11 : i64} {
  func.func @_phase_gru_kernel(%arg0: i32, %arg1: memref<16x32xf32, #tpu.memory_space<vmem>>, %arg2: memref<32x384xf32, #tpu.memory_space<vmem>>, %arg3: memref<128x384xf32, #tpu.memory_space<vmem>>, %arg4: memref<1x384xf32, #tpu.memory_space<vmem>>, %arg5: memref<1x128xf32, #tpu.memory_space<vmem>>, %arg6: memref<128x7xf32, #tpu.memory_space<vmem>>, %arg7: memref<1x7xf32, #tpu.memory_space<vmem>>, %arg8: memref<16x7xf32, #tpu.memory_space<vmem>>) attributes {dimension_semantics = [#tpu.dimension_semantics<arbitrary>], iteration_bounds = array<i64: 1>, scalar_prefetch = 0 : i64, scratch_operands = 0 : i64, tpu.core_type = #tpu.core_type<tc>, window_params = [{pipeline_mode = #tpu.pipeline_mode<synchronous>, transform_indices = @transform_0, window_bounds = array<i64: 16, 32>}, {pipeline_mode = #tpu.pipeline_mode<synchronous>, transform_indices = @transform_1, window_bounds = array<i64: 32, 384>}, {pipeline_mode = #tpu.pipeline_mode<synchronous>, transform_indices = @transform_2, window_bounds = array<i64: 128, 384>}, {pipeline_mode = #tpu.pipeline_mode<synchronous>, transform_indices = @transform_3, window_bounds = array<i64: 1, 384>}, {pipeline_mode = #tpu.pipeline_mode<synchronous>, transform_indices = @transform_4, window_bounds = array<i64: 1, 128>}, {pipeline_mode = #tpu.pipeline_mode<synchronous>, transform_indices = @transform_5, window_bounds = array<i64: 128, 7>}, {pipeline_mode = #tpu.pipeline_mode<synchronous>, transform_indices = @transform_6, window_bounds = array<i64: 1, 7>}, {pipeline_mode = #tpu.pipeline_mode<synchronous>, transform_indices = @transform_7, window_bounds = array<i64: 16, 7>}]} {
    %c0 = arith.constant 0 : index
    %c0_0 = arith.constant 0 : index
    %0 = vector.load %arg1[%c0, %c0_0] : memref<16x32xf32, #tpu.memory_space<vmem>>, vector<16x32xf32>
    %c0_1 = arith.constant 0 : index
    %c0_2 = arith.constant 0 : index
    %1 = vector.load %arg2[%c0_1, %c0_2] : memref<32x384xf32, #tpu.memory_space<vmem>>, vector<32x384xf32>
    %cst = arith.constant dense<0.000000e+00> : vector<16x384xf32>
    %2 = tpu.matmul %0, %1, %cst {dimension_numbers = #tpu.dot_dimension_numbers<[1], [0], [0], [1], [0, 0, 1, 1], [], []>} : vector<16x32xf32>, vector<32x384xf32>, vector<16x384xf32> -> vector<16x384xf32>
    %c0_3 = arith.constant 0 : index
    %c0_4 = arith.constant 0 : index
    %3 = vector.load %arg4[%c0_3, %c0_4] : memref<1x384xf32, #tpu.memory_space<vmem>>, vector<1x384xf32>
    %4 = vector.broadcast %3 : vector<1x384xf32> to vector<16x384xf32>
    %5 = arith.addf %2, %4 : vector<16x384xf32>
    %c0_5 = arith.constant 0 : index
    %c0_6 = arith.constant 0 : index
    %6 = vector.load %arg3[%c0_5, %c0_6] : memref<128x384xf32, #tpu.memory_space<vmem>>, vector<128x384xf32>
    %c0_7 = arith.constant 0 : index
    %c0_8 = arith.constant 0 : index
    %7 = vector.load %arg5[%c0_7, %c0_8] : memref<1x128xf32, #tpu.memory_space<vmem>>, vector<1x128xf32>
    %8 = vector.shape_cast %7 : vector<1x128xf32> to vector<1x128xf32>
    %9 = vector.broadcast %8 : vector<1x128xf32> to vector<2x128xf32>
    %cst_9 = arith.constant 0.000000e+00 : f32
    %10 = vector.broadcast %cst_9 : f32 to vector<2x128xf32>
    %11 = vector.extract_strided_slice %5 {offsets = [0, 0], sizes = [2, 384], strides = [1, 1]} : vector<16x384xf32> to vector<2x384xf32>
    %cst_10 = arith.constant dense<0.000000e+00> : vector<2x384xf32>
    %12 = tpu.matmul %10, %6, %cst_10 {dimension_numbers = #tpu.dot_dimension_numbers<[1], [0], [0], [1], [0, 0, 1, 1], [], []>} : vector<2x128xf32>, vector<128x384xf32>, vector<2x384xf32> -> vector<2x384xf32>
    %13 = vector.extract_strided_slice %11 {offsets = [0, 0], sizes = [2, 256], strides = [1, 1]} : vector<2x384xf32> to vector<2x256xf32>
    %14 = vector.extract_strided_slice %12 {offsets = [0, 0], sizes = [2, 256], strides = [1, 1]} : vector<2x384xf32> to vector<2x256xf32>
    %15 = arith.addf %13, %14 : vector<2x256xf32>
    %16 = arith.negf %15 : vector<2x256xf32>
    %17 = math.exp %16 : vector<2x256xf32>
    %cst_11 = arith.constant 1.000000e+00 : f32
    %18 = vector.broadcast %cst_11 : f32 to vector<2x256xf32>
    %19 = arith.addf %18, %17 : vector<2x256xf32>
    %20 = arith.divf %18, %19 : vector<2x256xf32>
    %21 = vector.extract_strided_slice %20 {offsets = [0, 0], sizes = [2, 128], strides = [1, 1]} : vector<2x256xf32> to vector<2x128xf32>
    %22 = vector.extract_strided_slice %20 {offsets = [0, 128], sizes = [2, 128], strides = [1, 1]} : vector<2x256xf32> to vector<2x128xf32>
    %23 = vector.extract_strided_slice %11 {offsets = [0, 256], sizes = [2, 128], strides = [1, 1]} : vector<2x384xf32> to vector<2x128xf32>
    %24 = vector.extract_strided_slice %12 {offsets = [0, 256], sizes = [2, 128], strides = [1, 1]} : vector<2x384xf32> to vector<2x128xf32>
    %25 = arith.addf %24, %9 : vector<2x128xf32>
    %26 = arith.mulf %21, %25 : vector<2x128xf32>
    %27 = arith.addf %23, %26 : vector<2x128xf32>
    %28 = math.tanh %27 : vector<2x128xf32>
    %29 = arith.subf %10, %28 : vector<2x128xf32>
    %30 = arith.mulf %22, %29 : vector<2x128xf32>
    %31 = arith.addf %28, %30 : vector<2x128xf32>
    %32 = vector.extract_strided_slice %5 {offsets = [2, 0], sizes = [2, 384], strides = [1, 1]} : vector<16x384xf32> to vector<2x384xf32>
    %cst_12 = arith.constant dense<0.000000e+00> : vector<2x384xf32>
    %33 = tpu.matmul %31, %6, %cst_12 {dimension_numbers = #tpu.dot_dimension_numbers<[1], [0], [0], [1], [0, 0, 1, 1], [], []>} : vector<2x128xf32>, vector<128x384xf32>, vector<2x384xf32> -> vector<2x384xf32>
    %34 = vector.extract_strided_slice %32 {offsets = [0, 0], sizes = [2, 256], strides = [1, 1]} : vector<2x384xf32> to vector<2x256xf32>
    %35 = vector.extract_strided_slice %33 {offsets = [0, 0], sizes = [2, 256], strides = [1, 1]} : vector<2x384xf32> to vector<2x256xf32>
    %36 = arith.addf %34, %35 : vector<2x256xf32>
    %37 = arith.negf %36 : vector<2x256xf32>
    %38 = math.exp %37 : vector<2x256xf32>
    %cst_13 = arith.constant 1.000000e+00 : f32
    %39 = vector.broadcast %cst_13 : f32 to vector<2x256xf32>
    %40 = arith.addf %39, %38 : vector<2x256xf32>
    %41 = arith.divf %39, %40 : vector<2x256xf32>
    %42 = vector.extract_strided_slice %41 {offsets = [0, 0], sizes = [2, 128], strides = [1, 1]} : vector<2x256xf32> to vector<2x128xf32>
    %43 = vector.extract_strided_slice %41 {offsets = [0, 128], sizes = [2, 128], strides = [1, 1]} : vector<2x256xf32> to vector<2x128xf32>
    %44 = vector.extract_strided_slice %32 {offsets = [0, 256], sizes = [2, 128], strides = [1, 1]} : vector<2x384xf32> to vector<2x128xf32>
    %45 = vector.extract_strided_slice %33 {offsets = [0, 256], sizes = [2, 128], strides = [1, 1]} : vector<2x384xf32> to vector<2x128xf32>
    %46 = arith.addf %45, %9 : vector<2x128xf32>
    %47 = arith.mulf %42, %46 : vector<2x128xf32>
    %48 = arith.addf %44, %47 : vector<2x128xf32>
    %49 = math.tanh %48 : vector<2x128xf32>
    %50 = arith.subf %31, %49 : vector<2x128xf32>
    %51 = arith.mulf %43, %50 : vector<2x128xf32>
    %52 = arith.addf %49, %51 : vector<2x128xf32>
    %53 = vector.extract_strided_slice %5 {offsets = [4, 0], sizes = [2, 384], strides = [1, 1]} : vector<16x384xf32> to vector<2x384xf32>
    %cst_14 = arith.constant dense<0.000000e+00> : vector<2x384xf32>
    %54 = tpu.matmul %52, %6, %cst_14 {dimension_numbers = #tpu.dot_dimension_numbers<[1], [0], [0], [1], [0, 0, 1, 1], [], []>} : vector<2x128xf32>, vector<128x384xf32>, vector<2x384xf32> -> vector<2x384xf32>
    %55 = vector.extract_strided_slice %53 {offsets = [0, 0], sizes = [2, 256], strides = [1, 1]} : vector<2x384xf32> to vector<2x256xf32>
    %56 = vector.extract_strided_slice %54 {offsets = [0, 0], sizes = [2, 256], strides = [1, 1]} : vector<2x384xf32> to vector<2x256xf32>
    %57 = arith.addf %55, %56 : vector<2x256xf32>
    %58 = arith.negf %57 : vector<2x256xf32>
    %59 = math.exp %58 : vector<2x256xf32>
    %cst_15 = arith.constant 1.000000e+00 : f32
    %60 = vector.broadcast %cst_15 : f32 to vector<2x256xf32>
    %61 = arith.addf %60, %59 : vector<2x256xf32>
    %62 = arith.divf %60, %61 : vector<2x256xf32>
    %63 = vector.extract_strided_slice %62 {offsets = [0, 0], sizes = [2, 128], strides = [1, 1]} : vector<2x256xf32> to vector<2x128xf32>
    %64 = vector.extract_strided_slice %62 {offsets = [0, 128], sizes = [2, 128], strides = [1, 1]} : vector<2x256xf32> to vector<2x128xf32>
    %65 = vector.extract_strided_slice %53 {offsets = [0, 256], sizes = [2, 128], strides = [1, 1]} : vector<2x384xf32> to vector<2x128xf32>
    %66 = vector.extract_strided_slice %54 {offsets = [0, 256], sizes = [2, 128], strides = [1, 1]} : vector<2x384xf32> to vector<2x128xf32>
    %67 = arith.addf %66, %9 : vector<2x128xf32>
    %68 = arith.mulf %63, %67 : vector<2x128xf32>
    %69 = arith.addf %65, %68 : vector<2x128xf32>
    %70 = math.tanh %69 : vector<2x128xf32>
    %71 = arith.subf %52, %70 : vector<2x128xf32>
    %72 = arith.mulf %64, %71 : vector<2x128xf32>
    %73 = arith.addf %70, %72 : vector<2x128xf32>
    %74 = vector.extract_strided_slice %5 {offsets = [6, 0], sizes = [2, 384], strides = [1, 1]} : vector<16x384xf32> to vector<2x384xf32>
    %cst_16 = arith.constant dense<0.000000e+00> : vector<2x384xf32>
    %75 = tpu.matmul %73, %6, %cst_16 {dimension_numbers = #tpu.dot_dimension_numbers<[1], [0], [0], [1], [0, 0, 1, 1], [], []>} : vector<2x128xf32>, vector<128x384xf32>, vector<2x384xf32> -> vector<2x384xf32>
    %76 = vector.extract_strided_slice %74 {offsets = [0, 0], sizes = [2, 256], strides = [1, 1]} : vector<2x384xf32> to vector<2x256xf32>
    %77 = vector.extract_strided_slice %75 {offsets = [0, 0], sizes = [2, 256], strides = [1, 1]} : vector<2x384xf32> to vector<2x256xf32>
    %78 = arith.addf %76, %77 : vector<2x256xf32>
    %79 = arith.negf %78 : vector<2x256xf32>
    %80 = math.exp %79 : vector<2x256xf32>
    %cst_17 = arith.constant 1.000000e+00 : f32
    %81 = vector.broadcast %cst_17 : f32 to vector<2x256xf32>
    %82 = arith.addf %81, %80 : vector<2x256xf32>
    %83 = arith.divf %81, %82 : vector<2x256xf32>
    %84 = vector.extract_strided_slice %83 {offsets = [0, 0], sizes = [2, 128], strides = [1, 1]} : vector<2x256xf32> to vector<2x128xf32>
    %85 = vector.extract_strided_slice %83 {offsets = [0, 128], sizes = [2, 128], strides = [1, 1]} : vector<2x256xf32> to vector<2x128xf32>
    %86 = vector.extract_strided_slice %74 {offsets = [0, 256], sizes = [2, 128], strides = [1, 1]} : vector<2x384xf32> to vector<2x128xf32>
    %87 = vector.extract_strided_slice %75 {offsets = [0, 256], sizes = [2, 128], strides = [1, 1]} : vector<2x384xf32> to vector<2x128xf32>
    %88 = arith.addf %87, %9 : vector<2x128xf32>
    %89 = arith.mulf %84, %88 : vector<2x128xf32>
    %90 = arith.addf %86, %89 : vector<2x128xf32>
    %91 = math.tanh %90 : vector<2x128xf32>
    %92 = arith.subf %73, %91 : vector<2x128xf32>
    %93 = arith.mulf %85, %92 : vector<2x128xf32>
    %94 = arith.addf %91, %93 : vector<2x128xf32>
    %95 = vector.extract_strided_slice %5 {offsets = [8, 0], sizes = [2, 384], strides = [1, 1]} : vector<16x384xf32> to vector<2x384xf32>
    %cst_18 = arith.constant dense<0.000000e+00> : vector<2x384xf32>
    %96 = tpu.matmul %94, %6, %cst_18 {dimension_numbers = #tpu.dot_dimension_numbers<[1], [0], [0], [1], [0, 0, 1, 1], [], []>} : vector<2x128xf32>, vector<128x384xf32>, vector<2x384xf32> -> vector<2x384xf32>
    %97 = vector.extract_strided_slice %95 {offsets = [0, 0], sizes = [2, 256], strides = [1, 1]} : vector<2x384xf32> to vector<2x256xf32>
    %98 = vector.extract_strided_slice %96 {offsets = [0, 0], sizes = [2, 256], strides = [1, 1]} : vector<2x384xf32> to vector<2x256xf32>
    %99 = arith.addf %97, %98 : vector<2x256xf32>
    %100 = arith.negf %99 : vector<2x256xf32>
    %101 = math.exp %100 : vector<2x256xf32>
    %cst_19 = arith.constant 1.000000e+00 : f32
    %102 = vector.broadcast %cst_19 : f32 to vector<2x256xf32>
    %103 = arith.addf %102, %101 : vector<2x256xf32>
    %104 = arith.divf %102, %103 : vector<2x256xf32>
    %105 = vector.extract_strided_slice %104 {offsets = [0, 0], sizes = [2, 128], strides = [1, 1]} : vector<2x256xf32> to vector<2x128xf32>
    %106 = vector.extract_strided_slice %104 {offsets = [0, 128], sizes = [2, 128], strides = [1, 1]} : vector<2x256xf32> to vector<2x128xf32>
    %107 = vector.extract_strided_slice %95 {offsets = [0, 256], sizes = [2, 128], strides = [1, 1]} : vector<2x384xf32> to vector<2x128xf32>
    %108 = vector.extract_strided_slice %96 {offsets = [0, 256], sizes = [2, 128], strides = [1, 1]} : vector<2x384xf32> to vector<2x128xf32>
    %109 = arith.addf %108, %9 : vector<2x128xf32>
    %110 = arith.mulf %105, %109 : vector<2x128xf32>
    %111 = arith.addf %107, %110 : vector<2x128xf32>
    %112 = math.tanh %111 : vector<2x128xf32>
    %113 = arith.subf %94, %112 : vector<2x128xf32>
    %114 = arith.mulf %106, %113 : vector<2x128xf32>
    %115 = arith.addf %112, %114 : vector<2x128xf32>
    %116 = vector.extract_strided_slice %5 {offsets = [10, 0], sizes = [2, 384], strides = [1, 1]} : vector<16x384xf32> to vector<2x384xf32>
    %cst_20 = arith.constant dense<0.000000e+00> : vector<2x384xf32>
    %117 = tpu.matmul %115, %6, %cst_20 {dimension_numbers = #tpu.dot_dimension_numbers<[1], [0], [0], [1], [0, 0, 1, 1], [], []>} : vector<2x128xf32>, vector<128x384xf32>, vector<2x384xf32> -> vector<2x384xf32>
    %118 = vector.extract_strided_slice %116 {offsets = [0, 0], sizes = [2, 256], strides = [1, 1]} : vector<2x384xf32> to vector<2x256xf32>
    %119 = vector.extract_strided_slice %117 {offsets = [0, 0], sizes = [2, 256], strides = [1, 1]} : vector<2x384xf32> to vector<2x256xf32>
    %120 = arith.addf %118, %119 : vector<2x256xf32>
    %121 = arith.negf %120 : vector<2x256xf32>
    %122 = math.exp %121 : vector<2x256xf32>
    %cst_21 = arith.constant 1.000000e+00 : f32
    %123 = vector.broadcast %cst_21 : f32 to vector<2x256xf32>
    %124 = arith.addf %123, %122 : vector<2x256xf32>
    %125 = arith.divf %123, %124 : vector<2x256xf32>
    %126 = vector.extract_strided_slice %125 {offsets = [0, 0], sizes = [2, 128], strides = [1, 1]} : vector<2x256xf32> to vector<2x128xf32>
    %127 = vector.extract_strided_slice %125 {offsets = [0, 128], sizes = [2, 128], strides = [1, 1]} : vector<2x256xf32> to vector<2x128xf32>
    %128 = vector.extract_strided_slice %116 {offsets = [0, 256], sizes = [2, 128], strides = [1, 1]} : vector<2x384xf32> to vector<2x128xf32>
    %129 = vector.extract_strided_slice %117 {offsets = [0, 256], sizes = [2, 128], strides = [1, 1]} : vector<2x384xf32> to vector<2x128xf32>
    %130 = arith.addf %129, %9 : vector<2x128xf32>
    %131 = arith.mulf %126, %130 : vector<2x128xf32>
    %132 = arith.addf %128, %131 : vector<2x128xf32>
    %133 = math.tanh %132 : vector<2x128xf32>
    %134 = arith.subf %115, %133 : vector<2x128xf32>
    %135 = arith.mulf %127, %134 : vector<2x128xf32>
    %136 = arith.addf %133, %135 : vector<2x128xf32>
    %137 = vector.extract_strided_slice %5 {offsets = [12, 0], sizes = [2, 384], strides = [1, 1]} : vector<16x384xf32> to vector<2x384xf32>
    %cst_22 = arith.constant dense<0.000000e+00> : vector<2x384xf32>
    %138 = tpu.matmul %136, %6, %cst_22 {dimension_numbers = #tpu.dot_dimension_numbers<[1], [0], [0], [1], [0, 0, 1, 1], [], []>} : vector<2x128xf32>, vector<128x384xf32>, vector<2x384xf32> -> vector<2x384xf32>
    %139 = vector.extract_strided_slice %137 {offsets = [0, 0], sizes = [2, 256], strides = [1, 1]} : vector<2x384xf32> to vector<2x256xf32>
    %140 = vector.extract_strided_slice %138 {offsets = [0, 0], sizes = [2, 256], strides = [1, 1]} : vector<2x384xf32> to vector<2x256xf32>
    %141 = arith.addf %139, %140 : vector<2x256xf32>
    %142 = arith.negf %141 : vector<2x256xf32>
    %143 = math.exp %142 : vector<2x256xf32>
    %cst_23 = arith.constant 1.000000e+00 : f32
    %144 = vector.broadcast %cst_23 : f32 to vector<2x256xf32>
    %145 = arith.addf %144, %143 : vector<2x256xf32>
    %146 = arith.divf %144, %145 : vector<2x256xf32>
    %147 = vector.extract_strided_slice %146 {offsets = [0, 0], sizes = [2, 128], strides = [1, 1]} : vector<2x256xf32> to vector<2x128xf32>
    %148 = vector.extract_strided_slice %146 {offsets = [0, 128], sizes = [2, 128], strides = [1, 1]} : vector<2x256xf32> to vector<2x128xf32>
    %149 = vector.extract_strided_slice %137 {offsets = [0, 256], sizes = [2, 128], strides = [1, 1]} : vector<2x384xf32> to vector<2x128xf32>
    %150 = vector.extract_strided_slice %138 {offsets = [0, 256], sizes = [2, 128], strides = [1, 1]} : vector<2x384xf32> to vector<2x128xf32>
    %151 = arith.addf %150, %9 : vector<2x128xf32>
    %152 = arith.mulf %147, %151 : vector<2x128xf32>
    %153 = arith.addf %149, %152 : vector<2x128xf32>
    %154 = math.tanh %153 : vector<2x128xf32>
    %155 = arith.subf %136, %154 : vector<2x128xf32>
    %156 = arith.mulf %148, %155 : vector<2x128xf32>
    %157 = arith.addf %154, %156 : vector<2x128xf32>
    %158 = vector.extract_strided_slice %5 {offsets = [14, 0], sizes = [2, 384], strides = [1, 1]} : vector<16x384xf32> to vector<2x384xf32>
    %cst_24 = arith.constant dense<0.000000e+00> : vector<2x384xf32>
    %159 = tpu.matmul %157, %6, %cst_24 {dimension_numbers = #tpu.dot_dimension_numbers<[1], [0], [0], [1], [0, 0, 1, 1], [], []>} : vector<2x128xf32>, vector<128x384xf32>, vector<2x384xf32> -> vector<2x384xf32>
    %160 = vector.extract_strided_slice %158 {offsets = [0, 0], sizes = [2, 256], strides = [1, 1]} : vector<2x384xf32> to vector<2x256xf32>
    %161 = vector.extract_strided_slice %159 {offsets = [0, 0], sizes = [2, 256], strides = [1, 1]} : vector<2x384xf32> to vector<2x256xf32>
    %162 = arith.addf %160, %161 : vector<2x256xf32>
    %163 = arith.negf %162 : vector<2x256xf32>
    %164 = math.exp %163 : vector<2x256xf32>
    %cst_25 = arith.constant 1.000000e+00 : f32
    %165 = vector.broadcast %cst_25 : f32 to vector<2x256xf32>
    %166 = arith.addf %165, %164 : vector<2x256xf32>
    %167 = arith.divf %165, %166 : vector<2x256xf32>
    %168 = vector.extract_strided_slice %167 {offsets = [0, 0], sizes = [2, 128], strides = [1, 1]} : vector<2x256xf32> to vector<2x128xf32>
    %169 = vector.extract_strided_slice %167 {offsets = [0, 128], sizes = [2, 128], strides = [1, 1]} : vector<2x256xf32> to vector<2x128xf32>
    %170 = vector.extract_strided_slice %158 {offsets = [0, 256], sizes = [2, 128], strides = [1, 1]} : vector<2x384xf32> to vector<2x128xf32>
    %171 = vector.extract_strided_slice %159 {offsets = [0, 256], sizes = [2, 128], strides = [1, 1]} : vector<2x384xf32> to vector<2x128xf32>
    %172 = arith.addf %171, %9 : vector<2x128xf32>
    %173 = arith.mulf %168, %172 : vector<2x128xf32>
    %174 = arith.addf %170, %173 : vector<2x128xf32>
    %175 = math.tanh %174 : vector<2x128xf32>
    %176 = arith.subf %157, %175 : vector<2x128xf32>
    %177 = arith.mulf %169, %176 : vector<2x128xf32>
    %178 = arith.addf %175, %177 : vector<2x128xf32>
    %179 = tpu.concatenate %31, %52, %73, %94, %115, %136, %157, %178 in 0 : vector<2x128xf32>, vector<2x128xf32>, vector<2x128xf32>, vector<2x128xf32>, vector<2x128xf32>, vector<2x128xf32>, vector<2x128xf32>, vector<2x128xf32> -> vector<16x128xf32>
    %c0_26 = arith.constant 0 : index
    %c0_27 = arith.constant 0 : index
    %180 = vector.load %arg6[%c0_26, %c0_27] : memref<128x7xf32, #tpu.memory_space<vmem>>, vector<128x7xf32>
    %cst_28 = arith.constant dense<0.000000e+00> : vector<16x7xf32>
    %181 = tpu.matmul %179, %180, %cst_28 {dimension_numbers = #tpu.dot_dimension_numbers<[1], [0], [0], [1], [0, 0, 1, 1], [], []>} : vector<16x128xf32>, vector<128x7xf32>, vector<16x7xf32> -> vector<16x7xf32>
    %c0_29 = arith.constant 0 : index
    %c0_30 = arith.constant 0 : index
    %182 = vector.load %arg7[%c0_29, %c0_30] : memref<1x7xf32, #tpu.memory_space<vmem>>, vector<1x7xf32>
    %183 = vector.broadcast %182 : vector<1x7xf32> to vector<16x7xf32>
    %184 = arith.addf %181, %183 : vector<16x7xf32>
    %c0_31 = arith.constant 0 : index
    %c0_32 = arith.constant 0 : index
    %185 = vector.load %arg8[%c0_31, %c0_32] : memref<16x7xf32, #tpu.memory_space<vmem>>, vector<16x7xf32>
    tpu.vector_store %arg8[%c0_31, %c0_32], %184 {strides = array<i32>} : memref<16x7xf32, #tpu.memory_space<vmem>>, vector<16x7xf32>,
    return
  }
  func.func @transform_0(%arg0: i32) -> (i32, i32) {
    %c0_i32 = arith.constant 0 : i32
    %c0_i32_0 = arith.constant 0 : i32
    %c0_i32_1 = arith.constant 0 : i32
    return %c0_i32, %c0_i32_0 : i32, i32
  }
  func.func @transform_1(%arg0: i32) -> (i32, i32) {
    %c0_i32 = arith.constant 0 : i32
    %c0_i32_0 = arith.constant 0 : i32
    %c0_i32_1 = arith.constant 0 : i32
    return %c0_i32, %c0_i32_0 : i32, i32
  }
  func.func @transform_2(%arg0: i32) -> (i32, i32) {
    %c0_i32 = arith.constant 0 : i32
    %c0_i32_0 = arith.constant 0 : i32
    %c0_i32_1 = arith.constant 0 : i32
    return %c0_i32, %c0_i32_0 : i32, i32
  }
  func.func @transform_3(%arg0: i32) -> (i32, i32) {
    %c0_i32 = arith.constant 0 : i32
    %c0_i32_0 = arith.constant 0 : i32
    %c0_i32_1 = arith.constant 0 : i32
    return %c0_i32, %c0_i32_0 : i32, i32
  }
  func.func @transform_4(%arg0: i32) -> (i32, i32) {
    %c0_i32 = arith.constant 0 : i32
    %c0_i32_0 = arith.constant 0 : i32
    %c0_i32_1 = arith.constant 0 : i32
    return %c0_i32, %c0_i32_0 : i32, i32
  }
  func.func @transform_5(%arg0: i32) -> (i32, i32) {
    %c0_i32 = arith.constant 0 : i32
    %c0_i32_0 = arith.constant 0 : i32
    %c0_i32_1 = arith.constant 0 : i32
    return %c0_i32, %c0_i32_0 : i32, i32
  }
  func.func @transform_6(%arg0: i32) -> (i32, i32) {
    %c0_i32 = arith.constant 0 : i32
    %c0_i32_0 = arith.constant 0 : i32
    %c0_i32_1 = arith.constant 0 : i32
    return %c0_i32, %c0_i32_0 : i32, i32
  }
  func.func @transform_7(%arg0: i32) -> (i32, i32) {
    %c0_i32 = arith.constant 0 : i32
    %c0_i32_0 = arith.constant 0 : i32
    %c0_i32_1 = arith.constant 0 : i32
    return %c0_i32, %c0_i32_0 : i32, i32
  }
}

</mosaic_0001>

<bundles_post_ra>
// kernel: tpu_custom_call.1
= control target key start
LH: loop header
LB: loop body
LE: loop exit
PB: predicated region body
PF: predicated region fallthrough
CT: control target
= control target key end

     0   :  { %12 = vsyncpa [#allocation3], 0  ;;  %s1402_s27 = smov [#allocation2]   ;;  %s1403_s29 = smov 384   ;;  %s2227_s0 = inlined_call_operand.vmem [shape: f32[16,32], index: 0, kind: input, shape index: {}]   ;;  %s2228_s1 = inlined_call_operand.vmem [shape: f32[32,384], index: 1, kind: input, shape index: {}]   ;;  %s2229_s2 = inlined_call_operand.hbm [shape: f32[128,384], index: 2, kind: input, shape index: {}]   ;;  %s2230_s3 = inlined_call_operand.vmem [shape: f32[1,384], index: 3, kind: input, shape index: {}]   ;;  %s2231_s4 = inlined_call_operand.vmem [shape: f32[1,128], index: 4, kind: input, shape index: {}]   ;;  %s2232_s5 = inlined_call_operand.vmem [shape: f32[128,7], index: 5, kind: input, shape index: {}]   ;;  %s2233_s6 = inlined_call_operand.vmem [shape: f32[1,7], index: 6, kind: input, shape index: {}]   ;;  %s2234_s7 = inlined_call_operand.vmem [shape: f32[16,7], index: 7, kind: output, shape index: {}]  }
   0x1   :  { %s21_s26 = sshll.u32 %s2229_s2, 4  ;;  %s23_s28 = sshll.u32 %s1402_s27, 4  ;;  %s22_s26 = int_to_ptr.hbm [resolvable:$true] %s21_s26  ;;  %s24_s28 = int_to_ptr.vmem [resolvable:$true] %s23_s28 }
   0x2   :  { %s1404_s30 = smov 24  }
   0x3   :  { %29 = dma.hbm_to_vmem [thread:$0]  %s22_s26, 6144, %s24_s28, [#allocation3], %s1403_s29, %s1403_s29, %s1404_s30  }
   0x4   :  { %1400 = dma.done.wait [#allocation3], 6144  }
   0x5   :  { %1401 = vsyncadd [#allocation3], 4294961152  ;;  %v53_v0 = vld [vmem:[%s2228_s1 + $0x48] sm:$0xff]  ;;  %v50_v2 = vld [vmem:[%s2228_s1 + $0x30] sm:$0xff]  ;;  %vm64_vm0 = vcmask 261120   ;;  %v1405_v52 = vmov 0.0  }
   0x6   :  { %v1452_v1 = vld [vmem:[#allocation2 + $0x168] sm:$0xff]  ;;  %83 = vmatpush.msra.mxu0 %v53_v0  ;;  %v1458_v3 = vld [vmem:[#allocation2 + $0x150] sm:$0xff]  ;;  %v47_v4 = vld [vmem:[%s2228_s1 + $0x18] sm:$0xff] }
   0x7   :  { %192 = vmatpush.msra.mxu3 %v1452_v1  ;;  %v1463_v5 = vld [vmem:[#allocation2 + $0x138] sm:$0xff]  ;;  %v44_v6 = vld [vmem:[%s2228_s1] sm:$0xff]  ;;  %v1472_v8 = vld [vmem:[#allocation2 + $0x170] sm:$0xff] }
   0x8   :  { %84 = vmatpush.msra.mxu0 %v50_v2  ;;  %v1469_v7 = vld [vmem:[#allocation2 + $0x120] sm:$0xff]  ;;  %v1474_v9 = vld [vmem:[#allocation2 + $0x108] sm:$0xff]  ;;  %v1477_v10 = vld [vmem:[#allocation2 + $0x158] sm:$0xff] }
   0x9   :  { %193 = vmatpush.msra.mxu3 %v1458_v3  ;;  %v1482_v11 = vld [vmem:[%s2227_s0] sm:$0xff]  ;;  %v1485_v12 = vld [vmem:[#allocation2 + $0xf0] sm:$0xff]  ;;  %v1496_v15 = vld [vmem:[#allocation2 + $0xd8] sm:$0xff] }
   0xa   :  { %85 = vmatpush.msra.mxu0 %v47_v4  ;;  %v1488_v13 = vld [vmem:[#allocation2 + $0x140] sm:$0xff]  ;;  %v54_v14 = vld [vmem:[%s2228_s1 + $0x50] sm:$0xff]  ;;  %v51_v16 = vld [vmem:[%s2228_s1 + $0x38] sm:$0xff] }
   0xb   :  { %194 = vmatpush.msra.mxu3 %v1463_v5  ;;  %106 = vmatpush.msra.mxu1 %v54_v14  ;;  %v1502_v17 = vld [vmem:[#allocation2 + $0x128] sm:$0xff]  ;;  %v1505_v18 = vld [vmem:[#allocation2 + $0xc0] sm:$0xff]  ;;  %v1511_v20 = vld [vmem:[#allocation2 + $0x110] sm:$0xff] }
   0xc   :  { %86 = vmatpush.msra.mxu0 %v44_v6  ;;  %v48_v19 = vld [vmem:[%s2228_s1 + $0x20] sm:$0xff]  ;;  %v45_v21 = vld [vmem:[%s2228_s1 + $0x8] sm:$0xff]  ;;  %v1525_v24 = vld [vmem:[#allocation2 + $0xf8] sm:$0xff] }
   0xd   :  { %195 = vmatpush.msra.mxu3 %v1469_v7  ;;  %1219 = vmatmul.msk.f32.vlgmr.msra.gmra.mxu0 %vm64_vm0, %v1482_v11  ;;  %v1517_v22 = vld [vmem:[#allocation2 + $0xa8] sm:$0xff]  ;;  %v1527_v25 = vld [vmem:[#allocation2 + $0x178] sm:$0xff]  ;;  %v1530_v26 = vld [vmem:[#allocation2 + $0x90] sm:$0xff] }
   0xe   :  { %212 = vmatpush.msrb.mxu0 %v1472_v8  ;;  %107 = vmatpush.msra.mxu1 %v51_v16  ;;  %v1522_v23 = vld [vmem:[%s2227_s0 + $0x8] sm:$0xff]  ;;  %v1533_v27 = vld [vmem:[#allocation2 + $0xe0] sm:$0xff]  ;;  %v1540_v29 = vld [vmem:[#allocation2 + $0x78] sm:$0xff] }
   0xf   :  { %196 = vmatpush.msra.mxu3 %v1474_v9  ;;  %v1537_v28 = vld [vmem:[#allocation2 + $0x160] sm:$0xff]  ;;  %v55_v30 = vld [vmem:[%s2228_s1 + $0x58] sm:$0xff]  ;;  %v1547_v31 = vld [vmem:[#allocation2 + $0xc8] sm:$0xff] }
  0x10   :  { %213 = vmatpush.msrb.mxu0 %v1477_v10  ;;  %108 = vmatpush.msra.mxu1 %v48_v19  ;;  %v1551_v32 = vld [vmem:[#allocation2 + $0x148] sm:$0xff]  ;;  %v1554_v33 = vld [vmem:[#allocation2 + $0x60] sm:$0xff]  ;;  %v1556_v34 = vld [vmem:[#allocation2 + $0xb0] sm:$0xff] }
  0x11   :  { %197 = vmatpush.msra.mxu3 %v1485_v12  ;;  %v52_v35 = vld [vmem:[%s2228_s1 + $0x40] sm:$0xff]  ;;  %v1563_v36 = vld [vmem:[#allocation2 + $0x130] sm:$0xff]  ;;  %129 = vmatpush.msra.mxu2 %v55_v30  ;;  %v1566_v37 = vld [vmem:[#allocation2 + $0x48] sm:$0xff] }
  0x12   :  { %214 = vmatpush.msrb.mxu0 %v1488_v13  ;;  %109 = vmatpush.msra.mxu1 %v45_v21  ;;  %v49_v38 = vld [vmem:[%s2228_s1 + $0x28] sm:$0xff]  ;;  %v1573_v39 = vld [vmem:[#allocation2 + $0x98] sm:$0xff]  ;;  %v1578_v41 = vld [vmem:[#allocation2 + $0x30] sm:$0xff] }
  0x13   :  { %198 = vmatpush.msra.mxu3 %v1496_v15  ;;  %1221 = vmatmul.msk.f32.vlgmr.msra.gmra.mxu1 %vm64_vm0, %v1482_v11  ;;  %v1575_v40 = vld [vmem:[#allocation2 + $0x118] sm:$0xff]  ;;  %v1582_v42 = vld [vmem:[#allocation2 + $0x80] sm:$0xff]  ;;  %v46_v45 = vld [vmem:[%s2228_s1 + $0x10] sm:$0xff] }
  0x14   :  { %215 = vmatpush.msrb.mxu0 %v1502_v17  ;;  %232 = vmatpush.msrb.mxu1 %v1527_v25  ;;  %v1584_v43 = vld [vmem:[#allocation2 + $0x100] sm:$0xff]  ;;  %v1587_v44 = vld [vmem:[#allocation2 + $0x18] sm:$0xff]  ;;  %v1594_v46 = vld [vmem:[#allocation2 + $0x68] sm:$0xff] }
  0x15   :  { %199 = vmatpush.msra.mxu3 %v1505_v18  ;;  %1220 = vmatmul.msk.f32.gmra.mxu0 %vm64_vm0, %v1522_v23  ;;  %2259 = vst [vmem:[#allocation5_spill] sm:$0xff] %v1587_v44  ;;  %v1596_v47 = vld [vmem:[#allocation2 + $0xe8] sm:$0xff]  ;;  %v1601_v48 = vld [vmem:[#allocation2] sm:$0xff]  ;;  %v1605_v49 = vld [vmem:[#allocation2 + $0x50] sm:$0xff] }
  0x16   :  { %216 = vmatpush.msrb.mxu0 %v1511_v20  ;;  %233 = vmatpush.msrb.mxu1 %v1537_v28  ;;  %2260 = vst [vmem:[#allocation6_spill] sm:$0xff] %v1601_v48  ;;  %v1609_v50 = vld [vmem:[#allocation2 + $0xd0] sm:$0xff]  ;;  %v1612_v51 = vld [vmem:[#allocation2 + $0x38] sm:$0xff]  ;;  %v1619_v54 = vld [vmem:[#allocation2 + $0x20] sm:$0xff] }
  0x17   :  { %200 = vmatpush.msra.mxu3 %v1517_v22  ;;  %130 = vmatpush.msra.mxu2 %v52_v35  ;;  %2261 = vst [vmem:[#allocation7_spill] sm:$0xff] %v1612_v51  ;;  %v1617_v53 = vld [vmem:[#allocation2 + $0xb8] sm:$0xff]  ;;  %v1624_v55 = vld [vmem:[#allocation2 + $0xa0] sm:$0xff]  ;;  %v1627_v56 = vld [vmem:[#allocation2 + $0x8] sm:$0xff] }
  0x18   :  { %217 = vmatpush.msrb.mxu0 %v1525_v24  ;;  %234 = vmatpush.msrb.mxu1 %v1551_v32  ;;  %2262 = vst [vmem:[#allocation8_spill] sm:$0xff] %v1619_v54  ;;  %v1632_v57 = vld [vmem:[#allocation2 + $0x88] sm:$0xff]  ;;  %v1638_v58 = vld [vmem:[#allocation2 + $0x70] sm:$0xff]  ;;  %v1642_v59 = vld [vmem:[#allocation2 + $0x58] sm:$0xff] }
  0x19   :  { %201 = vmatpush.msra.mxu3 %v1530_v26  ;;  %131 = vmatpush.msra.mxu2 %v49_v38  ;;  %2263 = vst [vmem:[#allocation9_spill] sm:$0xff] %v1627_v56  ;;  %v1648_v60 = vld [vmem:[#allocation2 + $0x40] sm:$0xff]  ;;  %v1654_v61 = vld [vmem:[#allocation2 + $0x28] sm:$0xff]  ;;  %v1660_v62 = vld [vmem:[#allocation2 + $0x10] sm:$0xff] }
  0x1a   :  { %218 = vmatpush.msrb.mxu0 %v1533_v27  ;;  %235 = vmatpush.msrb.mxu1 %v1563_v36  ;;  %2264 = vst [vmem:[#allocation10_spill] sm:$0xff] %v1654_v61  ;;  %v1782_v0 = vld [vmem:[%s2230_s3] sm:$0x7] }
  0x1b   :  { %202 = vmatpush.msra.mxu3 %v1540_v29  ;;  %1222 = vmatmul.msk.f32.gmra.mxu1 %vm64_vm0, %v1522_v23  ;;  %2265 = vst [vmem:[#allocation11_spill] sm:$0xff] %v1660_v62  ;;  %v58_v2 = vperm.slane %v1782_v0, 0  ;;  %v59_v14 = vperm.slane %v1782_v0, 1 }
  0x1c   :  { %219 = vmatpush.msrb.mxu0 %v1547_v31  ;;  %236 = vmatpush.msrb.mxu1 %v1575_v40  ;;  %2266 = vst [vmem:[#allocation12_spill] sm:$0xff] %v1782_v0 }
  0x1d   :  { %203 = vmatpush.msra.mxu3 %v1554_v33  ;;  %132 = vmatpush.msra.mxu2 %v46_v45 }
  0x1e   :  { %220 = vmatpush.msrb.mxu0 %v1556_v34  ;;  %237 = vmatpush.msrb.mxu1 %v1584_v43 }
  0x1f   :  { %204 = vmatpush.msra.mxu3 %v1566_v37  ;;  %1223 = vmatmul.msk.f32.vlgmr.msra.gmra.mxu2 %vm64_vm0, %v1482_v11 }
  0x20   :  { %221 = vmatpush.msrb.mxu0 %v1573_v39  ;;  %238 = vmatpush.msrb.mxu1 %v1596_v47 }
  0x21   :  { %205 = vmatpush.msra.mxu3 %v1578_v41  ;;  %299 = vmatpush.msrb.mxu2 %v1452_v1 }
  0x22   :  { %222 = vmatpush.msrb.mxu0 %v1582_v42  ;;  %239 = vmatpush.msrb.mxu1 %v1609_v50 }
  0x23   :  { %206 = vmatpush.msra.mxu3 %v1587_v44  ;;  %300 = vmatpush.msrb.mxu2 %v1458_v3 }
  0x24   :  { %223 = vmatpush.msrb.mxu0 %v1594_v46  ;;  %240 = vmatpush.msrb.mxu1 %v1617_v53 }
  0x25   :  { %207 = vmatpush.msra.mxu3 %v1601_v48  ;;  %301 = vmatpush.msrb.mxu2 %v1463_v5 }
  0x26   :  { %208 = vmatmul.f32.vlgmr.msra.gmra.mxu3 %v1405_v52  ;;  %224 = vmatpush.msrb.mxu0 %v1605_v49 }
  0x27   :  { %319 = vmatpush.msrb.mxu3 %v1472_v8  ;;  %241 = vmatpush.msrb.mxu1 %v1624_v55 }
  0x28   :  { %225 = vmatpush.msrb.mxu0 %v1612_v51  ;;  %302 = vmatpush.msrb.mxu2 %v1469_v7 }
  0x29   :  { %320 = vmatpush.msrb.mxu3 %v1477_v10  ;;  %242 = vmatpush.msrb.mxu1 %v1632_v57 }
  0x2a   :  { %226 = vmatpush.msrb.mxu0 %v1619_v54  ;;  %303 = vmatpush.msrb.mxu2 %v1474_v9 }
  0x2b   :  { %321 = vmatpush.msrb.mxu3 %v1488_v13  ;;  %243 = vmatpush.msrb.mxu1 %v1638_v58 }
  0x2c   :  { %227 = vmatpush.msrb.mxu0 %v1627_v56  ;;  %304 = vmatpush.msrb.mxu2 %v1485_v12 }
  0x2d   :  { %228 = vmatmul.f32.vlgmr.msrb.gmra.mxu0 %v1405_v52  ;;  %322 = vmatpush.msrb.mxu3 %v1502_v17 }
  0x2e   :  { %339 = vmatpush.msra.mxu0 %v1527_v25  ;;  %244 = vmatpush.msrb.mxu1 %v1642_v59 }
  0x2f   :  { %323 = vmatpush.msrb.mxu3 %v1511_v20  ;;  %305 = vmatpush.msrb.mxu2 %v1496_v15 }
  0x30   :  { %340 = vmatpush.msra.mxu0 %v1537_v28  ;;  %245 = vmatpush.msrb.mxu1 %v1648_v60 }
  0x31   :  { %324 = vmatpush.msrb.mxu3 %v1525_v24  ;;  %306 = vmatpush.msrb.mxu2 %v1505_v18 }
  0x32   :  { %341 = vmatpush.msra.mxu0 %v1551_v32  ;;  %246 = vmatpush.msrb.mxu1 %v1654_v61 }
  0x33   :  { %325 = vmatpush.msrb.mxu3 %v1533_v27  ;;  %307 = vmatpush.msrb.mxu2 %v1517_v22 }
  0x34   :  { %342 = vmatpush.msra.mxu0 %v1563_v36  ;;  %247 = vmatpush.msrb.mxu1 %v1660_v62 }
  0x35   :  { %326 = vmatpush.msrb.mxu3 %v1547_v31  ;;  %248 = vmatmul.f32.vlgmr.msrb.gmra.mxu1 %v1405_v52 }
  0x36   :  { %343 = vmatpush.msra.mxu0 %v1575_v40  ;;  %1224 = vmatmul.msk.f32.gmra.mxu2 %vm64_vm0, %v1522_v23 }
  0x37   :  { %327 = vmatpush.msrb.mxu3 %v1556_v34  ;;  %308 = vmatpush.msrb.mxu2 %v1530_v26 }
  0x38   :  { %344 = vmatpush.msra.mxu0 %v1584_v43  ;;  %424 = vmatpush.msra.mxu1 %v1452_v1 }
  0x39   :  { %328 = vmatpush.msrb.mxu3 %v1573_v39  ;;  %309 = vmatpush.msrb.mxu2 %v1540_v29 }
  0x3a   :  { %345 = vmatpush.msra.mxu0 %v1596_v47  ;;  %425 = vmatpush.msra.mxu1 %v1458_v3 }
  0x3b   :  { %329 = vmatpush.msrb.mxu3 %v1582_v42  ;;  %310 = vmatpush.msrb.mxu2 %v1554_v33 }
  0x3c   :  { %346 = vmatpush.msra.mxu0 %v1609_v50  ;;  %426 = vmatpush.msra.mxu1 %v1463_v5 }
  0x3d   :  { %330 = vmatpush.msrb.mxu3 %v1594_v46  ;;  %311 = vmatpush.msrb.mxu2 %v1566_v37 }
  0x3e   :  { %347 = vmatpush.msra.mxu0 %v1617_v53  ;;  %427 = vmatpush.msra.mxu1 %v1469_v7 }
  0x3f   :  { %331 = vmatpush.msrb.mxu3 %v1605_v49  ;;  %312 = vmatpush.msrb.mxu2 %v1578_v41 }
  0x40   :  { %348 = vmatpush.msra.mxu0 %v1624_v55  ;;  %428 = vmatpush.msra.mxu1 %v1474_v9 }
  0x41   :  { %332 = vmatpush.msrb.mxu3 %v1612_v51  ;;  %313 = vmatpush.msrb.mxu2 %v1587_v44 }
  0x42   :  { %349 = vmatpush.msra.mxu0 %v1632_v57  ;;  %429 = vmatpush.msra.mxu1 %v1485_v12 }
  0x43   :  { %333 = vmatpush.msrb.mxu3 %v1619_v54  ;;  %314 = vmatpush.msrb.mxu2 %v1601_v48 }
  0x44   :  { %350 = vmatpush.msra.mxu0 %v1638_v58  ;;  %430 = vmatpush.msra.mxu1 %v1496_v15 }
  0x45   :  { %334 = vmatpush.msrb.mxu3 %v1627_v56  ;;  %444 = vmatpush.msra.mxu2 %v1472_v8 }
  0x46   :  { %351 = vmatpush.msra.mxu0 %v1642_v59  ;;  %431 = vmatpush.msra.mxu1 %v1505_v18 }
  0x47   :  { %464 = vmatpush.msra.mxu3 %v1527_v25  ;;  %445 = vmatpush.msra.mxu2 %v1477_v10 }
  0x48   :  { %352 = vmatpush.msra.mxu0 %v1648_v60  ;;  %432 = vmatpush.msra.mxu1 %v1517_v22 }
  0x49   :  { %465 = vmatpush.msra.mxu3 %v1537_v28  ;;  %446 = vmatpush.msra.mxu2 %v1488_v13 }
  0x4a   :  { %353 = vmatpush.msra.mxu0 %v1654_v61  ;;  %433 = vmatpush.msra.mxu1 %v1530_v26 }
  0x4b   :  { %466 = vmatpush.msra.mxu3 %v1551_v32  ;;  %447 = vmatpush.msra.mxu2 %v1502_v17 }
  0x4c   :  { %354 = vmatpush.msra.mxu0 %v1660_v62  ;;  %434 = vmatpush.msra.mxu1 %v1540_v29 }
  0x4d   :  { %467 = vmatpush.msra.mxu3 %v1563_v36  ;;  %448 = vmatpush.msra.mxu2 %v1511_v20 }
  0x4e   :  { %549 = vmatpush.msrb.mxu0 %v1452_v1  ;;  %435 = vmatpush.msra.mxu1 %v1554_v33 }
  0x4f   :  { %468 = vmatpush.msra.mxu3 %v1575_v40  ;;  %449 = vmatpush.msra.mxu2 %v1525_v24 }
  0x50   :  { %550 = vmatpush.msrb.mxu0 %v1458_v3  ;;  %436 = vmatpush.msra.mxu1 %v1566_v37 }
  0x51   :  { %469 = vmatpush.msra.mxu3 %v1584_v43  ;;  %450 = vmatpush.msra.mxu2 %v1533_v27 }
  0x52   :  { %551 = vmatpush.msrb.mxu0 %v1463_v5  ;;  %437 = vmatpush.msra.mxu1 %v1578_v41 }
  0x53   :  { %470 = vmatpush.msra.mxu3 %v1596_v47  ;;  %451 = vmatpush.msra.mxu2 %v1547_v31 }
  0x54   :  { %552 = vmatpush.msrb.mxu0 %v1469_v7  ;;  %438 = vmatpush.msra.mxu1 %v1587_v44 }
  0x55   :  { %471 = vmatpush.msra.mxu3 %v1609_v50  ;;  %452 = vmatpush.msra.mxu2 %v1556_v34 }
  0x56   :  { %553 = vmatpush.msrb.mxu0 %v1474_v9  ;;  %439 = vmatpush.msra.mxu1 %v1601_v48 }
  0x57   :  { %472 = vmatpush.msra.mxu3 %v1617_v53  ;;  %453 = vmatpush.msra.mxu2 %v1573_v39 }
  0x58   :  { %554 = vmatpush.msrb.mxu0 %v1485_v12  ;;  %569 = vmatpush.msrb.mxu1 %v1472_v8 }
  0x59   :  { %473 = vmatpush.msra.mxu3 %v1624_v55  ;;  %454 = vmatpush.msra.mxu2 %v1582_v42 }
  0x5a   :  { %555 = vmatpush.msrb.mxu0 %v1496_v15  ;;  %570 = vmatpush.msrb.mxu1 %v1477_v10 }
  0x5b   :  { %474 = vmatpush.msra.mxu3 %v1632_v57  ;;  %455 = vmatpush.msra.mxu2 %v1594_v46 }
  0x5c   :  { %556 = vmatpush.msrb.mxu0 %v1505_v18  ;;  %571 = vmatpush.msrb.mxu1 %v1488_v13 }
  0x5d   :  { %475 = vmatpush.msra.mxu3 %v1638_v58  ;;  %456 = vmatpush.msra.mxu2 %v1605_v49 }
  0x5e   :  { %557 = vmatpush.msrb.mxu0 %v1517_v22  ;;  %572 = vmatpush.msrb.mxu1 %v1502_v17 }
  0x5f   :  { %476 = vmatpush.msra.mxu3 %v1642_v59  ;;  %457 = vmatpush.msra.mxu2 %v1612_v51 }
  0x60   :  { %558 = vmatpush.msrb.mxu0 %v1530_v26  ;;  %573 = vmatpush.msrb.mxu1 %v1511_v20 }
  0x61   :  { %477 = vmatpush.msra.mxu3 %v1648_v60  ;;  %458 = vmatpush.msra.mxu2 %v1619_v54 }
  0x62   :  { %559 = vmatpush.msrb.mxu0 %v1540_v29  ;;  %574 = vmatpush.msrb.mxu1 %v1525_v24 }
  0x63   :  { %478 = vmatpush.msra.mxu3 %v1654_v61  ;;  %459 = vmatpush.msra.mxu2 %v1627_v56 }
  0x64   :  { %560 = vmatpush.msrb.mxu0 %v1554_v33  ;;  %575 = vmatpush.msrb.mxu1 %v1533_v27 }
  0x65   :  { %479 = vmatpush.msra.mxu3 %v1660_v62 }
  0x66   :  { %561 = vmatpush.msrb.mxu0 %v1566_v37  ;;  %576 = vmatpush.msrb.mxu1 %v1547_v31 }
  0x68   :  { %562 = vmatpush.msrb.mxu0 %v1578_v41  ;;  %577 = vmatpush.msrb.mxu1 %v1556_v34 }
  0x6a   :  { %563 = vmatpush.msrb.mxu0 %v1587_v44  ;;  %578 = vmatpush.msrb.mxu1 %v1573_v39 }
  0x6c   :  { %564 = vmatpush.msrb.mxu0 %v1601_v48  ;;  %579 = vmatpush.msrb.mxu1 %v1582_v42 }
  0x6e   :  { %580 = vmatpush.msrb.mxu1 %v1594_v46 }
  0x70   :  { %581 = vmatpush.msrb.mxu1 %v1605_v49 }
  0x72   :  { %582 = vmatpush.msrb.mxu1 %v1612_v51 }
  0x74   :  { %583 = vmatpush.msrb.mxu1 %v1619_v54 }
  0x76   :  { %584 = vmatpush.msrb.mxu1 %v1627_v56 }
  0x8a   :  { %v88_v63 = vpop.f32.mrf.mxu0 }
  0x8b   :  { %v1790_v21 = vadd.f32 %v88_v63, %v58_v2 }
  0x8d   :  { %2269 = vst [vmem:[#allocation15_spill] sm:$0xff] %v1790_v21 }
  0x90   :  { %v111_v11 = vpop.f32.mrf.mxu1 }
  0x91   :  { %v1792_v23 = vadd.f32 %v111_v11, %v59_v14 }
  0x92   :  { %v91_v4 = vpop.f32.mrf.mxu0 }
  0x93   :  { %v1785_v6 = vadd.f32 %v91_v4, %v58_v2  ;;  %2270 = vst [vmem:[#allocation16_spill] sm:$0xff] %v1792_v23 }
  0x95   :  { %2267 = vst [vmem:[#allocation13_spill] sm:$0xff] %v1785_v6 }
  0x98   :  { %v114_v16 = vpop.f32.mrf.mxu1 }
  0x99   :  { %v1788_v19 = vadd.f32 %v114_v16, %v59_v14  ;;  %v1799_v14 = vld [vmem:[%s2231_s4] ss:$0 sm:$0xff] }
  0x9a   :  { %2271 = vst [vmem:[#allocation17_spill] sm:$0xff] %v1799_v14 }
  0x9b   :  { %2268 = vst [vmem:[#allocation14_spill] sm:$0xff] %v1788_v19 }
  0xa9   :  { %v209_v30 = vpop.f32.mrf.mxu3 }
  0xaa   :  { %v252_v35 = vadd.f32 %v209_v30, %v1790_v21  ;;  %v229_v38 = vpop.f32.mrf.mxu0 }
  0xab   :  { %v253_v45 = vadd.f32 %v229_v38, %v1792_v23 }
  0xac   :  { %v1225_v52 = vmul.f32 -1.442695, %v252_v35 }
  0xad   :  { %v1226_v56 = vmul.f32 -1.442695, %v253_v45 }
  0xae   :  { %1247 = vpow2.f32 %v1225_v52  ;;  %v2255_v52 = vperm.slane %v1782_v0, 2 }
  0xaf   :  { %1249 = vpow2.f32 %v1226_v56 }
  0xb2   :  { %v249_v35 = vpop.f32.mrf.mxu1 }
  0xb3   :  { %v292_v19 = vadd.f32 %v1799_v14, %v249_v35 }
  0xb4   :  { %v1248_v4 = vpop.eup %1247 }
  0xb5   :  { %v1250_v6 = vpop.eup %1249  ;;  %v260_v48 = vadd.f32 1.0, %v1248_v4 }
  0xb6   :  { %v261_v62 = vadd.f32 1.0, %v1250_v6  ;;  %v134_v6 = vpop.f32.mrf.mxu2 }
  0xb7   :  { %1251 = vrcp.f32 %v260_v48  ;;  %v273_v38 = vand.u32 2147483648, %v260_v48  ;;  %v271_v56 = vand.u32 2147483647, %v260_v48  ;;  %vm267_vm2 = vweird.f32 %v260_v48 }
  0xb8   :  { %1253 = vrcp.f32 %v261_v62  ;;  %vm282_vm5 = vweird.f32 %v261_v62  ;;  %v286_v35 = vand.u32 2147483647, %v261_v62 }
  0xb9   :  { %v274_v21 = vor.u32 1.1754944e-38, %v273_v38  ;;  %vm272_vm4 = vcmp.eq.f32.partialorder %v271_v56, 8.507059e+37 }
  0xba   :  { %vm287_vm8 = vcmp.eq.f32.partialorder %v286_v35, 8.507059e+37  ;;  %v2280_v35 = vld [vmem:[#allocation15_spill] sm:$0xff] }
  0xbd   :  { %v1252_v63 = vpop.eup %1251 }
  0xbe   :  { %v1254_v2 = vpop.eup %1253  ;;  %v263_v11 = vmul.f32 %v1252_v63, %v260_v48  ;;  %vm268_vm1 = vweird.f32 %v1252_v63 }
  0xbf   :  { %v278_v30 = vmul.f32 %v1254_v2, %v261_v62  ;;  %vm269_vm3 = vmor %vm267_vm2, %vm268_vm1  ;;  %vm283_vm6 = vweird.f32 %v1254_v2 }
  0xc0   :  { %v264_v16 = vsub.f32 1.0, %v263_v11  ;;  %v1805_v11 = vadd.f32 %v134_v6, %v2255_v52  ;;  %vm284_vm7 = vmor %vm282_vm5, %vm283_vm6 }
  0xc1   :  { %v279_v23 = vsub.f32 1.0, %v278_v30 }
  0xc2   :  { %v265_v45 = vmul.f32 %v1252_v63, %v264_v16 }
  0xc3   :  { %v280_v61 = vmul.f32 %v1254_v2, %v279_v23  ;;  %v1861_v23 = vpop.f32.mrf.mxu2 }
  0xc4   :  { %v266_v4 = vadd.f32 %v1252_v63, %v265_v45  ;;  %v288_v45 = vand.u32 2147483648, %v261_v62  ;;  %v2276_v62 = vld [vmem:[#allocation11_spill] sm:$0xff]  ;;  %2279 = vst [vmem:[#allocation18_spill] sm:$0xff] %v1861_v23 }
  0xc5   :  { %v281_v48 = vadd.f32 %v1254_v2, %v280_v61  ;;  %v2275_v61 = vld [vmem:[#allocation8_spill] sm:$0xff] }
  0xc6   :  { %v270_v54 = vsel %vm269_vm3, %v1252_v63, %v266_v4  ;;  %v289_v30 = vor.u32 1.1754944e-38, %v288_v45 }
  0xc7   :  { %v275_v44 = vsel %vm272_vm4, %v274_v21, %v270_v54  ;;  %v285_v63 = vsel %vm284_vm7, %v1254_v2, %v281_v48  ;;  %v2274_v54 = vld [vmem:[#allocation5_spill] sm:$0xff] }
  0xc8   :  { %v293_v16 = vmul.f32 %v292_v19, %v275_v44  ;;  %v290_v4 = vsel %vm287_vm8, %v289_v30, %v285_v63  ;;  %v2272_v44 = vld [vmem:[#allocation7_spill] sm:$0xff]  ;;  %v2277_v19 = vld [vmem:[#allocation6_spill] sm:$0xff]  ;;  %v2278_v21 = vld [vmem:[#allocation9_spill] sm:$0xff] }
  0xc9   :  { %v2281_v63 = vld [vmem:[#allocation16_spill] sm:$0xff] }
  0xca   :  { %v294_v51 = vadd.f32 %v293_v16, %v1805_v11 }
  0xcc   :  { %1255 = vtanh.f32 %v294_v51  ;;  %v2273_v51 = vld [vmem:[#allocation10_spill] sm:$0xff] }
  0xd2   :  { %v1256_v38 = vpop.eup %1255 }
  0xd3   :  { %v296_v56 = vsub.f32 0.0, %v1256_v38 }
  0xd5   :  { %v297_v6 = vmul.f32 %v296_v56, %v290_v4 }
  0xd7   :  { %v1808_v52 = vadd.f32 %v1256_v38, %v297_v6 }
  0xd9   :  { %315 = vmatmul.f32.vlgmr.msrb.gmra.mxu2 %v1808_v52  ;;  %335 = vmatmul.f32.vlgmr.msrb.gmra.mxu3 %v1808_v52 }
  0xda   :  { %355 = vmatmul.f32.vlgmr.msra.gmra.mxu0 %v1808_v52  ;;  %589 = vmatpush.msrb.mxu2 %v1527_v25 }
  0xdb   :  { %674 = vmatpush.msrb.mxu3 %v1452_v1  ;;  %694 = vmatpush.msra.mxu0 %v1472_v8 }
  0xdc   :  { %590 = vmatpush.msrb.mxu2 %v1537_v28 }
  0xdd   :  { %675 = vmatpush.msrb.mxu3 %v1458_v3  ;;  %695 = vmatpush.msra.mxu0 %v1477_v10 }
  0xde   :  { %591 = vmatpush.msrb.mxu2 %v1551_v32 }
  0xdf   :  { %676 = vmatpush.msrb.mxu3 %v1463_v5  ;;  %696 = vmatpush.msra.mxu0 %v1488_v13 }
  0xe0   :  { %592 = vmatpush.msrb.mxu2 %v1563_v36 }
  0xe1   :  { %677 = vmatpush.msrb.mxu3 %v1469_v7  ;;  %697 = vmatpush.msra.mxu0 %v1502_v17 }
  0xe2   :  { %593 = vmatpush.msrb.mxu2 %v1575_v40 }
  0xe3   :  { %678 = vmatpush.msrb.mxu3 %v1474_v9  ;;  %698 = vmatpush.msra.mxu0 %v1511_v20 }
  0xe4   :  { %594 = vmatpush.msrb.mxu2 %v1584_v43 }
  0xe5   :  { %679 = vmatpush.msrb.mxu3 %v1485_v12  ;;  %699 = vmatpush.msra.mxu0 %v1525_v24 }
  0xe6   :  { %595 = vmatpush.msrb.mxu2 %v1596_v47 }
  0xe7   :  { %680 = vmatpush.msrb.mxu3 %v1496_v15  ;;  %700 = vmatpush.msra.mxu0 %v1533_v27 }
  0xe8   :  { %596 = vmatpush.msrb.mxu2 %v1609_v50 }
  0xe9   :  { %681 = vmatpush.msrb.mxu3 %v1505_v18  ;;  %701 = vmatpush.msra.mxu0 %v1547_v31 }
  0xea   :  { %597 = vmatpush.msrb.mxu2 %v1617_v53 }
  0xeb   :  { %682 = vmatpush.msrb.mxu3 %v1517_v22  ;;  %702 = vmatpush.msra.mxu0 %v1556_v34 }
  0xec   :  { %598 = vmatpush.msrb.mxu2 %v1624_v55 }
  0xed   :  { %683 = vmatpush.msrb.mxu3 %v1530_v26  ;;  %703 = vmatpush.msra.mxu0 %v1573_v39 }
  0xee   :  { %599 = vmatpush.msrb.mxu2 %v1632_v57 }
  0xef   :  { %684 = vmatpush.msrb.mxu3 %v1540_v29  ;;  %704 = vmatpush.msra.mxu0 %v1582_v42 }
  0xf0   :  { %600 = vmatpush.msrb.mxu2 %v1638_v58 }
  0xf1   :  { %685 = vmatpush.msrb.mxu3 %v1554_v33  ;;  %705 = vmatpush.msra.mxu0 %v1594_v46 }
  0xf2   :  { %601 = vmatpush.msrb.mxu2 %v1642_v59 }
  0xf3   :  { %686 = vmatpush.msrb.mxu3 %v1566_v37  ;;  %706 = vmatpush.msra.mxu0 %v1605_v49 }
  0xf4   :  { %602 = vmatpush.msrb.mxu2 %v1648_v60 }
  0xf5   :  { %687 = vmatpush.msrb.mxu3 %v1578_v41  ;;  %707 = vmatpush.msra.mxu0 %v2272_v44 }
  0xf6   :  { %603 = vmatpush.msrb.mxu2 %v2273_v51 }
  0xf7   :  { %688 = vmatpush.msrb.mxu3 %v2274_v54  ;;  %708 = vmatpush.msra.mxu0 %v2275_v61 }
  0xf8   :  { %604 = vmatpush.msrb.mxu2 %v2276_v62 }
  0xf9   :  { %689 = vmatpush.msrb.mxu3 %v2277_v19  ;;  %709 = vmatpush.msra.mxu0 %v2278_v21 }
 0x157   :  { %v356_v61 = vpop.f32.mrf.mxu0 }
 0x15c   :  { %v316_v2 = vpop.f32.mrf.mxu2  ;;  %v336_v16 = vpop.f32.mrf.mxu3 }
 0x15d   :  { %v361_v45 = vrot.slane %v316_v2, 6  ;;  %v362_v48 = vrot.slane %v336_v16, 6 }
 0x15f   :  { %v365_v30 = vadd.f32 %v361_v45, %v2280_v35  ;;  %v366_v38 = vadd.f32 %v362_v48, %v2281_v63  ;;  %v405_v45 = vadd.f32 %v1799_v14, %v356_v61 }
 0x161   :  { %v1227_v56 = vmul.f32 -1.442695, %v365_v30  ;;  %v1228_v4 = vmul.f32 -1.442695, %v366_v38 }
 0x163   :  { %1257 = vpow2.f32 %v1227_v56 }
 0x164   :  { %1259 = vpow2.f32 %v1228_v4  ;;  %v407_v4 = vrot.slane %v405_v45, 6 }
 0x169   :  { %v1258_v6 = vpop.eup %1257 }
 0x16a   :  { %v1260_v0 = vpop.eup %1259  ;;  %v373_v62 = vadd.f32 1.0, %v1258_v6 }
 0x16b   :  { %v374_v19 = vadd.f32 1.0, %v1260_v0 }
 0x16c   :  { %1261 = vrcp.f32 %v373_v62  ;;  %v386_v2 = vand.u32 2147483648, %v373_v62  ;;  %v384_v48 = vand.u32 2147483647, %v373_v62  ;;  %vm380_vm10 = vweird.f32 %v373_v62 }
 0x16d   :  { %1263 = vrcp.f32 %v374_v19  ;;  %v401_v14 = vand.u32 2147483648, %v374_v19  ;;  %vm395_vm14 = vweird.f32 %v374_v19 }
 0x16e   :  { %v387_v38 = vor.u32 1.1754944e-38, %v386_v2  ;;  %vm385_vm12 = vcmp.eq.f32.partialorder %v384_v48, 8.507059e+37 }
 0x172   :  { %v1262_v21 = vpop.eup %1261 }
 0x173   :  { %v376_v23 = vmul.f32 %v1262_v21, %v373_v62  ;;  %v1264_v16 = vpop.eup %1263  ;;  %vm381_vm9 = vweird.f32 %v1262_v21 }
 0x174   :  { %vm382_vm11 = vmor %vm380_vm10, %vm381_vm9  ;;  %v391_v56 = vmul.f32 %v1264_v16, %v374_v19  ;;  %vm396_vm13 = vweird.f32 %v1264_v16 }
 0x175   :  { %v377_v54 = vsub.f32 1.0, %v376_v23  ;;  %vm397_vm15 = vmor %vm395_vm14, %vm396_vm13 }
 0x176   :  { %v392_v51 = vsub.f32 1.0, %v391_v56 }
 0x177   :  { %v378_v35 = vmul.f32 %v1262_v21, %v377_v54 }
 0x178   :  { %v393_v44 = vmul.f32 %v1264_v16, %v392_v51 }
 0x179   :  { %v379_v30 = vadd.f32 %v1262_v21, %v378_v35  ;;  %v399_v35 = vand.u32 2147483647, %v374_v19 }
 0x17a   :  { %v394_v61 = vadd.f32 %v1264_v16, %v393_v44 }
 0x17b   :  { %v383_v6 = vsel %vm382_vm11, %v1262_v21, %v379_v30  ;;  %v402_v21 = vor.u32 1.1754944e-38, %v401_v14  ;;  %vm400_vm0 = vcmp.eq.f32.partialorder %v399_v35, 8.507059e+37 }
 0x17c   :  { %v388_v0 = vsel %vm385_vm12, %v387_v38, %v383_v6  ;;  %v398_v2 = vsel %vm397_vm15, %v1264_v16, %v394_v61 }
 0x17d   :  { %v409_v63 = vmul.f32 %v407_v4, %v388_v0  ;;  %v403_v30 = vsel %vm400_vm0, %v402_v21, %v398_v2  ;;  %v2291_v0 = vld [vmem:[#allocation17_spill] sm:$0xff] }
 0x17f   :  { %v410_v23 = vadd.f32 %v409_v63, %v1805_v11 }
 0x181   :  { %1265 = vtanh.f32 %v410_v23 }
 0x187   :  { %v1266_v54 = vpop.eup %1265 }
 0x188   :  { %v413_v62 = vrot.slane %v1266_v54, 2 }
 0x18a   :  { %v415_v45 = vsub.f32 %v1808_v52, %v413_v62 }
 0x18c   :  { %v417_v48 = vrot.slane %v415_v45, 6 }
 0x18e   :  { %v419_v38 = vmul.f32 %v417_v48, %v403_v30 }
 0x190   :  { %v1868_v56 = vadd.f32 %v1266_v54, %v419_v38 }
 0x192   :  { %v422_v51 = vrot.slane %v1868_v56, 2 }
 0x194   :  { %440 = vmatmul.f32.vlgmr.msra.gmra.mxu1 %v422_v51  ;;  %460 = vmatmul.f32.vlgmr.msra.gmra.mxu2 %v422_v51 }
 0x195   :  { %480 = vmatmul.f32.vlgmr.msra.gmra.mxu3 %v422_v51  ;;  %714 = vmatpush.msra.mxu1 %v1527_v25 }
 0x196   :  { %787 = vmatpush.msra.mxu2 %v1452_v1  ;;  %807 = vmatpush.msra.mxu3 %v1472_v8  ;;  %v2282_v1 = vld [vmem:[#allocation7_spill] sm:$0xff] }
 0x197   :  { %715 = vmatpush.msra.mxu1 %v1537_v28  ;;  %v2286_v8 = vld [vmem:[#allocation11_spill] sm:$0xff] }
 0x198   :  { %788 = vmatpush.msra.mxu2 %v1458_v3  ;;  %808 = vmatpush.msra.mxu3 %v1477_v10  ;;  %v2283_v3 = vld [vmem:[#allocation10_spill] sm:$0xff]  ;;  %v2288_v10 = vld [vmem:[#allocation9_spill] sm:$0xff] }
 0x199   :  { %716 = vmatpush.msra.mxu1 %v1551_v32 }
 0x19a   :  { %789 = vmatpush.msra.mxu2 %v1463_v5  ;;  %809 = vmatpush.msra.mxu3 %v1488_v13  ;;  %v2284_v5 = vld [vmem:[#allocation5_spill] sm:$0xff] }
 0x19b   :  { %717 = vmatpush.msra.mxu1 %v1563_v36 }
 0x19c   :  { %790 = vmatpush.msra.mxu2 %v1469_v7  ;;  %810 = vmatpush.msra.mxu3 %v1502_v17  ;;  %v2285_v7 = vld [vmem:[#allocation8_spill] sm:$0xff] }
 0x19d   :  { %718 = vmatpush.msra.mxu1 %v1575_v40 }
 0x19e   :  { %791 = vmatpush.msra.mxu2 %v1474_v9  ;;  %811 = vmatpush.msra.mxu3 %v1511_v20  ;;  %v2287_v9 = vld [vmem:[#allocation6_spill] sm:$0xff] }
 0x19f   :  { %719 = vmatpush.msra.mxu1 %v1584_v43 }
 0x1a0   :  { %792 = vmatpush.msra.mxu2 %v1485_v12  ;;  %812 = vmatpush.msra.mxu3 %v1525_v24  ;;  %v2290_v24 = vld [vmem:[#allocation16_spill] sm:$0xff] }
 0x1a1   :  { %720 = vmatpush.msra.mxu1 %v1596_v47 }
 0x1a2   :  { %793 = vmatpush.msra.mxu2 %v1496_v15  ;;  %813 = vmatpush.msra.mxu3 %v1533_v27  ;;  %v2289_v15 = vld [vmem:[#allocation15_spill] sm:$0xff] }
 0x1a3   :  { %721 = vmatpush.msra.mxu1 %v1609_v50 }
 0x1a4   :  { %794 = vmatpush.msra.mxu2 %v1505_v18  ;;  %814 = vmatpush.msra.mxu3 %v1547_v31 }
 0x1a5   :  { %722 = vmatpush.msra.mxu1 %v1617_v53 }
 0x1a6   :  { %795 = vmatpush.msra.mxu2 %v1517_v22  ;;  %815 = vmatpush.msra.mxu3 %v1556_v34 }
 0x1a7   :  { %723 = vmatpush.msra.mxu1 %v1624_v55 }
 0x1a8   :  { %796 = vmatpush.msra.mxu2 %v1530_v26  ;;  %816 = vmatpush.msra.mxu3 %v1573_v39 }
 0x1a9   :  { %724 = vmatpush.msra.mxu1 %v1632_v57 }
 0x1aa   :  { %797 = vmatpush.msra.mxu2 %v1540_v29  ;;  %817 = vmatpush.msra.mxu3 %v1582_v42 }
 0x1ab   :  { %725 = vmatpush.msra.mxu1 %v1638_v58 }
 0x1ac   :  { %798 = vmatpush.msra.mxu2 %v1554_v33  ;;  %818 = vmatpush.msra.mxu3 %v1594_v46 }
 0x1ad   :  { %726 = vmatpush.msra.mxu1 %v1642_v59 }
 0x1ae   :  { %799 = vmatpush.msra.mxu2 %v1566_v37  ;;  %819 = vmatpush.msra.mxu3 %v1605_v49 }
 0x1af   :  { %727 = vmatpush.msra.mxu1 %v1648_v60 }
 0x1b0   :  { %800 = vmatpush.msra.mxu2 %v1578_v41  ;;  %820 = vmatpush.msra.mxu3 %v2282_v1 }
 0x1b1   :  { %728 = vmatpush.msra.mxu1 %v2283_v3 }
 0x1b2   :  { %801 = vmatpush.msra.mxu2 %v2284_v5  ;;  %821 = vmatpush.msra.mxu3 %v2285_v7 }
 0x1b3   :  { %729 = vmatpush.msra.mxu1 %v2286_v8 }
 0x1b4   :  { %802 = vmatpush.msra.mxu2 %v2287_v9  ;;  %822 = vmatpush.msra.mxu3 %v2288_v10 }
 0x211   :  { %v441_v12 = vpop.f32.mrf.mxu1 }
 0x212   :  { %v486_v13 = vrot.slane %v441_v12, 4 }
 0x214   :  { %v490_v17 = vadd.f32 %v486_v13, %v2289_v15 }
 0x216   :  { %v1229_v18 = vmul.f32 -1.442695, %v490_v17 }
 0x217   :  { %v461_v20 = vpop.f32.mrf.mxu2 }
 0x218   :  { %1267 = vpow2.f32 %v1229_v18  ;;  %v487_v22 = vrot.slane %v461_v20, 4  ;;  %v481_v19 = vpop.f32.mrf.mxu3 }
 0x219   :  { %v530_v23 = vadd.f32 %v2291_v0, %v481_v19  ;;  %v1928_v19 = vld [vmem:[#allocation2 + $0x168] sm:$0xff] }
 0x21a   :  { %v491_v26 = vadd.f32 %v487_v22, %v2290_v24 }
 0x21b   :  { %v532_v45 = vrot.slane %v530_v23, 4  ;;  %v1959_v23 = vld [vmem:[#allocation2 + $0x110] sm:$0xff] }
 0x21c   :  { %v1230_v27 = vmul.f32 -1.442695, %v491_v26 }
 0x21e   :  { %v1268_v29 = vpop.eup %1267  ;;  %1269 = vpow2.f32 %v1230_v27 }
 0x21f   :  { %v498_v31 = vadd.f32 1.0, %v1268_v29 }
 0x221   :  { %1271 = vrcp.f32 %v498_v31  ;;  %v511_v16 = vand.u32 2147483648, %v498_v31  ;;  %v509_v6 = vand.u32 2147483647, %v498_v31  ;;  %vm505_vm2 = vweird.f32 %v498_v31 }
 0x223   :  { %v512_v62 = vor.u32 1.1754944e-38, %v511_v16  ;;  %vm510_vm4 = vcmp.eq.f32.partialorder %v509_v6, 8.507059e+37  ;;  %v1938_v16 = vld [vmem:[#allocation2 + $0x158] sm:$0xff]  ;;  %v1952_v6 = vld [vmem:[#allocation2 + $0x128] sm:$0xff] }
 0x224   :  { %v1270_v33 = vpop.eup %1269 }
 0x225   :  { %v499_v37 = vadd.f32 1.0, %v1270_v33 }
 0x227   :  { %v1272_v14 = vpop.eup %1271  ;;  %1273 = vrcp.f32 %v499_v37  ;;  %v526_v17 = vand.u32 2147483648, %v499_v37  ;;  %vm520_vm6 = vweird.f32 %v499_v37  ;;  %v524_v20 = vand.u32 2147483647, %v499_v37 }
 0x228   :  { %v501_v44 = vmul.f32 %v1272_v14, %v498_v31  ;;  %vm506_vm1 = vweird.f32 %v1272_v14 }
 0x229   :  { %vm507_vm3 = vmor %vm505_vm2, %vm506_vm1  ;;  %v527_v27 = vor.u32 1.1754944e-38, %v526_v17  ;;  %vm525_vm8 = vcmp.eq.f32.partialorder %v524_v20, 8.507059e+37 }
 0x22a   :  { %v502_v63 = vsub.f32 1.0, %v501_v44 }
 0x22c   :  { %v503_v4 = vmul.f32 %v1272_v14, %v502_v63  ;;  %v1935_v63 = vld [vmem:[#allocation2 + $0x150] sm:$0xff] }
 0x22d   :  { %v1274_v61 = vpop.eup %1273 }
 0x22e   :  { %v504_v54 = vadd.f32 %v1272_v14, %v503_v4  ;;  %v516_v35 = vmul.f32 %v1274_v61, %v499_v37  ;;  %vm521_vm5 = vweird.f32 %v1274_v61  ;;  %v1931_v37 = vld [vmem:[#allocation2 + $0x170] sm:$0xff]  ;;  %v1945_v4 = vld [vmem:[#allocation2 + $0x140] sm:$0xff] }
 0x22f   :  { %vm522_vm7 = vmor %vm520_vm6, %vm521_vm5 }
 0x230   :  { %v508_v2 = vsel %vm507_vm3, %v1272_v14, %v504_v54  ;;  %v517_v30 = vsub.f32 1.0, %v516_v35  ;;  %v1973_v54 = vld [vmem:[#allocation2 + $0xe0] sm:$0xff]  ;;  %v1980_v35 = vld [vmem:[#allocation2 + $0xc8] sm:$0xff] }
 0x231   :  { %v513_v21 = vsel %vm510_vm4, %v512_v62, %v508_v2  ;;  %v1989_v62 = vld [vmem:[#allocation2 + $0x90] sm:$0xff] }
 0x232   :  { %v534_v48 = vmul.f32 %v532_v45, %v513_v21  ;;  %v518_v51 = vmul.f32 %v1274_v61, %v517_v30 }
 0x234   :  { %v535_v38 = vadd.f32 %v534_v48, %v1805_v11  ;;  %v519_v12 = vadd.f32 %v1274_v61, %v518_v51 }
 0x236   :  { %1275 = vtanh.f32 %v535_v38  ;;  %v523_v26 = vsel %vm522_vm7, %v1274_v61, %v519_v12  ;;  %v1966_v61 = vld [vmem:[#allocation2 + $0xf8] sm:$0xff] }
 0x237   :  { %v528_v31 = vsel %vm525_vm8, %v527_v27, %v523_v26 }
 0x23c   :  { %v1276_v13 = vpop.eup %1275 }
 0x23d   :  { %v538_v18 = vrot.slane %v1276_v13, 2 }
 0x23f   :  { %v540_v22 = vsub.f32 %v1868_v56, %v538_v18 }
 0x241   :  { %v542_v29 = vrot.slane %v540_v22, 6 }
 0x243   :  { %v544_v33 = vmul.f32 %v542_v29, %v528_v31 }
 0x245   :  { %v1924_v14 = vadd.f32 %v1276_v13, %v544_v33 }
 0x247   :  { %v547_v44 = vrot.slane %v1924_v14, 4 }
 0x249   :  { %565 = vmatmul.f32.vlgmr.msrb.gmra.mxu0 %v547_v44  ;;  %585 = vmatmul.f32.vlgmr.msrb.gmra.mxu1 %v547_v44 }
 0x24a   :  { %605 = vmatmul.f32.vlgmr.msrb.gmra.mxu2 %v547_v44  ;;  %827 = vmatpush.msrb.mxu0 %v1527_v25  ;;  %v1942_v25 = vld [vmem:[#allocation2 + $0x138] sm:$0xff] }
 0x24b   :  { %912 = vmatpush.msrb.mxu1 %v1928_v19  ;;  %932 = vmatpush.msrb.mxu2 %v1931_v37 }
 0x24c   :  { %828 = vmatpush.msrb.mxu0 %v1537_v28  ;;  %v1949_v28 = vld [vmem:[#allocation2 + $0x120] sm:$0xff] }
 0x24d   :  { %913 = vmatpush.msrb.mxu1 %v1935_v63  ;;  %933 = vmatpush.msrb.mxu2 %v1938_v16 }
 0x24e   :  { %829 = vmatpush.msrb.mxu0 %v1551_v32  ;;  %v1956_v32 = vld [vmem:[#allocation2 + $0x108] sm:$0xff] }
 0x24f   :  { %914 = vmatpush.msrb.mxu1 %v1942_v25  ;;  %934 = vmatpush.msrb.mxu2 %v1945_v4 }
 0x250   :  { %830 = vmatpush.msrb.mxu0 %v1563_v36  ;;  %v1963_v36 = vld [vmem:[#allocation2 + $0xf0] sm:$0xff] }
 0x251   :  { %915 = vmatpush.msrb.mxu1 %v1949_v28  ;;  %935 = vmatpush.msrb.mxu2 %v1952_v6 }
 0x252   :  { %831 = vmatpush.msrb.mxu0 %v1575_v40  ;;  %v1970_v40 = vld [vmem:[#allocation2 + $0xd8] sm:$0xff] }
 0x253   :  { %916 = vmatpush.msrb.mxu1 %v1956_v32  ;;  %936 = vmatpush.msrb.mxu2 %v1959_v23 }
 0x254   :  { %832 = vmatpush.msrb.mxu0 %v1584_v43  ;;  %v1977_v43 = vld [vmem:[#allocation2 + $0xc0] sm:$0xff] }
 0x255   :  { %917 = vmatpush.msrb.mxu1 %v1963_v36  ;;  %937 = vmatpush.msrb.mxu2 %v1966_v61 }
 0x256   :  { %833 = vmatpush.msrb.mxu0 %v1596_v47  ;;  %v1984_v47 = vld [vmem:[#allocation2 + $0xa8] sm:$0xff] }
 0x257   :  { %918 = vmatpush.msrb.mxu1 %v1970_v40  ;;  %938 = vmatpush.msrb.mxu2 %v1973_v54 }
 0x258   :  { %834 = vmatpush.msrb.mxu0 %v1609_v50  ;;  %v1994_v50 = vld [vmem:[#allocation2 + $0x78] sm:$0xff] }
 0x259   :  { %919 = vmatpush.msrb.mxu1 %v1977_v43  ;;  %939 = vmatpush.msrb.mxu2 %v1980_v35 }
 0x25a   :  { %835 = vmatpush.msrb.mxu0 %v1617_v53  ;;  %v1999_v53 = vld [vmem:[#allocation2 + $0x60] sm:$0xff] }
 0x25b   :  { %920 = vmatpush.msrb.mxu1 %v1984_v47  ;;  %940 = vmatpush.msrb.mxu2 %v1556_v34  ;;  %v2004_v34 = vld [vmem:[#allocation2 + $0x48] sm:$0xff] }
 0x25c   :  { %836 = vmatpush.msrb.mxu0 %v1624_v55 }
 0x25d   :  { %921 = vmatpush.msrb.mxu1 %v1989_v62  ;;  %941 = vmatpush.msrb.mxu2 %v1573_v39 }
 0x25e   :  { %837 = vmatpush.msrb.mxu0 %v1632_v57 }
 0x25f   :  { %922 = vmatpush.msrb.mxu1 %v1994_v50  ;;  %942 = vmatpush.msrb.mxu2 %v1582_v42 }
 0x260   :  { %838 = vmatpush.msrb.mxu0 %v1638_v58 }
 0x261   :  { %923 = vmatpush.msrb.mxu1 %v1999_v53  ;;  %943 = vmatpush.msrb.mxu2 %v1594_v46 }
 0x262   :  { %839 = vmatpush.msrb.mxu0 %v1642_v59 }
 0x263   :  { %924 = vmatpush.msrb.mxu1 %v2004_v34  ;;  %944 = vmatpush.msrb.mxu2 %v1605_v49 }
 0x264   :  { %840 = vmatpush.msrb.mxu0 %v1648_v60 }
 0x265   :  { %925 = vmatpush.msrb.mxu1 %v1578_v41  ;;  %945 = vmatpush.msrb.mxu2 %v2282_v1 }
 0x266   :  { %841 = vmatpush.msrb.mxu0 %v2283_v3 }
 0x267   :  { %926 = vmatpush.msrb.mxu1 %v2284_v5  ;;  %946 = vmatpush.msrb.mxu2 %v2285_v7 }
 0x268   :  { %842 = vmatpush.msrb.mxu0 %v2286_v8 }
 0x269   :  { %927 = vmatpush.msrb.mxu1 %v2287_v9  ;;  %947 = vmatpush.msrb.mxu2 %v2288_v10 }
 0x2c6   :  { %v566_v39 = vpop.f32.mrf.mxu0  ;;  %v586_v42 = vpop.f32.mrf.mxu1 }
 0x2c7   :  { %v611_v46 = vrot.slane %v566_v39, 2  ;;  %v612_v49 = vrot.slane %v586_v42, 2 }
 0x2c9   :  { %v615_v41 = vadd.f32 %v611_v46, %v2289_v15  ;;  %v616_v55 = vadd.f32 %v612_v49, %v2290_v24 }
 0x2cb   :  { %v1231_v57 = vmul.f32 -1.442695, %v615_v41  ;;  %v1232_v58 = vmul.f32 -1.442695, %v616_v55  ;;  %v2025_v55 = vld [vmem:[#allocation2 + $0x178] sm:$0xff] }
 0x2cd   :  { %1277 = vpow2.f32 %v1231_v57  ;;  %v606_v8 = vpop.f32.mrf.mxu2  ;;  %v2030_v57 = vld [vmem:[#allocation2 + $0x160] sm:$0xff] }
 0x2ce   :  { %1279 = vpow2.f32 %v1232_v58  ;;  %v655_v24 = vadd.f32 %v2291_v0, %v606_v8  ;;  %v2035_v58 = vld [vmem:[#allocation2 + $0x148] sm:$0xff] }
 0x2d0   :  { %v657_v51 = vrot.slane %v655_v24, 2 }
 0x2d3   :  { %v1278_v59 = vpop.eup %1277 }
 0x2d4   :  { %v1280_v60 = vpop.eup %1279  ;;  %v623_v1 = vadd.f32 1.0, %v1278_v59  ;;  %v2040_v59 = vld [vmem:[#allocation2 + $0x130] sm:$0xff] }
 0x2d5   :  { %v624_v3 = vadd.f32 1.0, %v1280_v60  ;;  %v2091_v60 = vld [vmem:[#allocation2 + $0x10] sm:$0xff] }
 0x2d6   :  { %1281 = vrcp.f32 %v623_v1  ;;  %v636_v10 = vand.u32 2147483648, %v623_v1  ;;  %v634_v15 = vand.u32 2147483647, %v623_v1  ;;  %vm630_vm10 = vweird.f32 %v623_v1 }
 0x2d7   :  { %1283 = vrcp.f32 %v624_v3  ;;  %v651_v27 = vand.u32 2147483648, %v624_v3  ;;  %vm645_vm14 = vweird.f32 %v624_v3  ;;  %v649_v31 = vand.u32 2147483647, %v624_v3 }
 0x2d8   :  { %v637_v30 = vor.u32 1.1754944e-38, %v636_v10  ;;  %vm635_vm12 = vcmp.eq.f32.partialorder %v634_v15, 8.507059e+37 }
 0x2d9   :  { %v652_v39 = vor.u32 1.1754944e-38, %v651_v27  ;;  %vm650_vm0 = vcmp.eq.f32.partialorder %v649_v31, 8.507059e+37 }
 0x2dc   :  { %v1282_v5 = vpop.eup %1281 }
 0x2dd   :  { %v626_v7 = vmul.f32 %v1282_v5, %v623_v1  ;;  %v1284_v2 = vpop.eup %1283  ;;  %vm631_vm9 = vweird.f32 %v1282_v5  ;;  %v1374_v1 = vld [vmem:[#allocation2 + $0x8] sm:$0xff] }
 0x2de   :  { %v641_v48 = vmul.f32 %v1284_v2, %v624_v3  ;;  %vm632_vm11 = vmor %vm630_vm10, %vm631_vm9  ;;  %vm646_vm13 = vweird.f32 %v1284_v2 }
 0x2df   :  { %v627_v9 = vsub.f32 1.0, %v626_v7  ;;  %vm647_vm15 = vmor %vm645_vm14, %vm646_vm13 }
 0x2e0   :  { %v642_v17 = vsub.f32 1.0, %v641_v48 }
 0x2e1   :  { %v628_v45 = vmul.f32 %v1282_v5, %v627_v9  ;;  %v2293_v9 = vld [vmem:[#allocation13_spill] sm:$0xff] }
 0x2e2   :  { %v643_v20 = vmul.f32 %v1284_v2, %v642_v17 }
 0x2e3   :  { %v629_v21 = vadd.f32 %v1282_v5, %v628_v45 }
 0x2e4   :  { %v644_v22 = vadd.f32 %v1284_v2, %v643_v20 }
 0x2e5   :  { %v633_v38 = vsel %vm632_vm11, %v1282_v5, %v629_v21  ;;  %v2292_v5 = vld [vmem:[#allocation14_spill] sm:$0xff] }
 0x2e6   :  { %v638_v12 = vsel %vm635_vm12, %v637_v30, %v633_v38  ;;  %v648_v44 = vsel %vm647_vm15, %v1284_v2, %v644_v22 }
 0x2e7   :  { %v659_v13 = vmul.f32 %v657_v51, %v638_v12  ;;  %v653_v46 = vsel %vm650_vm0, %v652_v39, %v648_v44  ;;  %v2294_v44 = vld [vmem:[#allocation12_spill] sm:$0xff] }
 0x2e8   :  { %v2295_v39 = vperm.slane %v2294_v44, 2  ;;  %v1168_v44 = vld [vmem:[%s2232_s5] sm:$0xff] }
 0x2e9   :  { %v660_v18 = vadd.f32 %v659_v13, %v1805_v11 }
 0x2eb   :  { %1285 = vtanh.f32 %v660_v18 }
 0x2f1   :  { %v1286_v26 = vpop.eup %1285 }
 0x2f2   :  { %v663_v29 = vrot.slane %v1286_v26, 2 }
 0x2f4   :  { %v665_v33 = vsub.f32 %v1924_v14, %v663_v29 }
 0x2f6   :  { %v667_v42 = vrot.slane %v665_v33, 6 }
 0x2f8   :  { %v669_v49 = vmul.f32 %v667_v42, %v653_v46  ;;  %v2296_v42 = vld [vmem:[#allocation18_spill] sm:$0xff] }
 0x2f9   :  { %v2100_v46 = vadd.f32 %v2296_v42, %v2295_v39 }
 0x2fa   :  { %v2022_v41 = vadd.f32 %v1286_v26, %v669_v49 }
 0x2fc   :  { %v672_v11 = vrot.slane %v2022_v41, 6 }
 0x2fe   :  { %690 = vmatmul.f32.vlgmr.msrb.gmra.mxu3 %v672_v11  ;;  %710 = vmatmul.f32.vlgmr.msra.gmra.mxu0 %v672_v11 }
 0x2ff   :  { %730 = vmatmul.f32.vlgmr.msra.gmra.mxu1 %v672_v11  ;;  %952 = vmatpush.msrb.mxu3 %v2025_v55 }
 0x300   :  { %1037 = vmatpush.msra.mxu0 %v1928_v19  ;;  %1057 = vmatpush.msra.mxu1 %v1931_v37  ;;  %v2045_v19 = vld [vmem:[#allocation2 + $0x118] sm:$0xff]  ;;  %v2050_v37 = vld [vmem:[#allocation2 + $0x100] sm:$0xff] }
 0x301   :  { %953 = vmatpush.msrb.mxu3 %v2030_v57 }
 0x302   :  { %1038 = vmatpush.msra.mxu0 %v1935_v63  ;;  %1058 = vmatpush.msra.mxu1 %v1938_v16  ;;  %v2055_v63 = vld [vmem:[#allocation2 + $0xe8] sm:$0xff]  ;;  %v2060_v16 = vld [vmem:[#allocation2 + $0xd0] sm:$0xff] }
 0x303   :  { %954 = vmatpush.msrb.mxu3 %v2035_v58 }
 0x304   :  { %1039 = vmatpush.msra.mxu0 %v1942_v25  ;;  %1059 = vmatpush.msra.mxu1 %v1945_v4  ;;  %v2065_v25 = vld [vmem:[#allocation2 + $0xb8] sm:$0xff]  ;;  %v1357_v4 = vld [vmem:[#allocation2 + $0xb0] sm:$0xff] }
 0x305   :  { %955 = vmatpush.msrb.mxu3 %v2040_v59 }
 0x306   :  { %1040 = vmatpush.msra.mxu0 %v1949_v28  ;;  %1060 = vmatpush.msra.mxu1 %v1952_v6  ;;  %v2069_v28 = vld [vmem:[#allocation2 + $0xa0] sm:$0xff]  ;;  %v1359_v6 = vld [vmem:[#allocation2 + $0x98] sm:$0xff] }
 0x307   :  { %956 = vmatpush.msrb.mxu3 %v2045_v19 }
 0x308   :  { %1041 = vmatpush.msra.mxu0 %v1956_v32  ;;  %1061 = vmatpush.msra.mxu1 %v1959_v23  ;;  %v2073_v32 = vld [vmem:[#allocation2 + $0x88] sm:$0xff]  ;;  %v1361_v23 = vld [vmem:[#allocation2 + $0x80] sm:$0xff] }
 0x309   :  { %957 = vmatpush.msrb.mxu3 %v2050_v37 }
 0x30a   :  { %1042 = vmatpush.msra.mxu0 %v1963_v36  ;;  %1062 = vmatpush.msra.mxu1 %v1966_v61  ;;  %v2077_v36 = vld [vmem:[#allocation2 + $0x70] sm:$0xff]  ;;  %v1363_v61 = vld [vmem:[#allocation2 + $0x68] sm:$0xff] }
 0x30b   :  { %958 = vmatpush.msrb.mxu3 %v2055_v63 }
 0x30c   :  { %1043 = vmatpush.msra.mxu0 %v1970_v40  ;;  %1063 = vmatpush.msra.mxu1 %v1973_v54  ;;  %v2081_v40 = vld [vmem:[#allocation2 + $0x58] sm:$0xff]  ;;  %v1365_v54 = vld [vmem:[#allocation2 + $0x50] sm:$0xff] }
 0x30d   :  { %959 = vmatpush.msrb.mxu3 %v2060_v16 }
 0x30e   :  { %1044 = vmatpush.msra.mxu0 %v1977_v43  ;;  %1064 = vmatpush.msra.mxu1 %v1980_v35  ;;  %v2085_v43 = vld [vmem:[#allocation2 + $0x40] sm:$0xff]  ;;  %v1367_v35 = vld [vmem:[#allocation2 + $0x30] sm:$0xff] }
 0x30f   :  { %960 = vmatpush.msrb.mxu3 %v2065_v25 }
 0x310   :  { %1045 = vmatpush.msra.mxu0 %v1984_v47  ;;  %1065 = vmatpush.msra.mxu1 %v1357_v4  ;;  %v1368_v47 = vld [vmem:[#allocation2 + $0x38] sm:$0xff] }
 0x311   :  { %961 = vmatpush.msrb.mxu3 %v2069_v28 }
 0x312   :  { %1046 = vmatpush.msra.mxu0 %v1989_v62  ;;  %1066 = vmatpush.msra.mxu1 %v1359_v6  ;;  %v2088_v62 = vld [vmem:[#allocation2 + $0x28] sm:$0xff] }
 0x313   :  { %962 = vmatpush.msrb.mxu3 %v2073_v32 }
 0x314   :  { %1047 = vmatpush.msra.mxu0 %v1994_v50  ;;  %1067 = vmatpush.msra.mxu1 %v1361_v23  ;;  %v1370_v50 = vld [vmem:[#allocation2 + $0x18] sm:$0xff] }
 0x315   :  { %963 = vmatpush.msrb.mxu3 %v2077_v36 }
 0x316   :  { %1048 = vmatpush.msra.mxu0 %v1999_v53  ;;  %1068 = vmatpush.msra.mxu1 %v1363_v61  ;;  %v1371_v53 = vld [vmem:[#allocation2 + $0x20] sm:$0xff] }
 0x317   :  { %964 = vmatpush.msrb.mxu3 %v2081_v40 }
 0x318   :  { %1049 = vmatpush.msra.mxu0 %v2004_v34  ;;  %1069 = vmatpush.msra.mxu1 %v1365_v54  ;;  %v1373_v34 = vld [vmem:[#allocation2] sm:$0xff] }
 0x319   :  { %965 = vmatpush.msrb.mxu3 %v2085_v43 }
 0x31a   :  { %1050 = vmatpush.msra.mxu0 %v1367_v35  ;;  %1070 = vmatpush.msra.mxu1 %v1368_v47 }
 0x31b   :  { %966 = vmatpush.msrb.mxu3 %v2088_v62 }
 0x31c   :  { %1051 = vmatpush.msra.mxu0 %v1370_v50  ;;  %1071 = vmatpush.msra.mxu1 %v1371_v53 }
 0x31d   :  { %967 = vmatpush.msrb.mxu3 %v2091_v60 }
 0x31e   :  { %1052 = vmatpush.msra.mxu0 %v1373_v34  ;;  %1072 = vmatpush.msra.mxu1 %v1374_v1 }
 0x37b   :  { %v711_v3 = vpop.f32.mrf.mxu0 }
 0x37c   :  { %v735_v7 = vadd.f32 %v711_v3, %v2292_v5  ;;  %v731_v20 = vpop.f32.mrf.mxu1 }
 0x37d   :  { %v774_v29 = vadd.f32 %v2291_v0, %v731_v20 }
 0x37e   :  { %v1234_v2 = vmul.f32 -1.442695, %v735_v7 }
 0x381   :  { %v691_v8 = vpop.f32.mrf.mxu3 }
 0x382   :  { %v734_v10 = vadd.f32 %v691_v8, %v2293_v9 }
 0x384   :  { %v1233_v45 = vmul.f32 -1.442695, %v734_v10 }
 0x386   :  { %1287 = vpow2.f32 %v1233_v45  ;;  %v1175_v45 = vld [vmem:[%s2232_s5 + $0x38] sm:$0xff] }
 0x387   :  { %1289 = vpow2.f32 %v1234_v2 }
 0x38c   :  { %v1288_v15 = vpop.eup %1287 }
 0x38d   :  { %v1290_v24 = vpop.eup %1289  ;;  %v742_v21 = vadd.f32 1.0, %v1288_v15  ;;  %v1174_v15 = vld [vmem:[%s2232_s5 + $0x30] sm:$0xff] }
 0x38e   :  { %v743_v48 = vadd.f32 1.0, %v1290_v24 }
 0x38f   :  { %1291 = vrcp.f32 %v742_v21  ;;  %v755_v12 = vand.u32 2147483648, %v742_v21  ;;  %v753_v18 = vand.u32 2147483647, %v742_v21  ;;  %vm749_vm2 = vweird.f32 %v742_v21 }
 0x390   :  { %1293 = vrcp.f32 %v743_v48  ;;  %v770_v54 = vand.u32 2147483648, %v743_v48  ;;  %vm764_vm6 = vweird.f32 %v743_v48  ;;  %v768_v0 = vand.u32 2147483647, %v743_v48 }
 0x391   :  { %v756_v27 = vor.u32 1.1754944e-38, %v755_v12  ;;  %vm754_vm4 = vcmp.eq.f32.partialorder %v753_v18, 8.507059e+37 }
 0x392   :  { %v771_v53 = vor.u32 1.1754944e-38, %v770_v54  ;;  %vm769_vm8 = vcmp.eq.f32.partialorder %v768_v0, 8.507059e+37 }
 0x395   :  { %v1292_v30 = vpop.eup %1291 }
 0x396   :  { %v745_v38 = vmul.f32 %v1292_v30, %v742_v21  ;;  %v1294_v13 = vpop.eup %1293  ;;  %vm750_vm1 = vweird.f32 %v1292_v30  ;;  %v1173_v21 = vld [vmem:[%s2232_s5 + $0x28] sm:$0xff] }
 0x397   :  { %v760_v26 = vmul.f32 %v1294_v13, %v743_v48  ;;  %vm751_vm3 = vmor %vm749_vm2, %vm750_vm1  ;;  %vm765_vm5 = vweird.f32 %v1294_v13  ;;  %v1172_v48 = vld [vmem:[%s2232_s5 + $0x20] sm:$0xff]  ;;  %vm1159_vm1 = vcmask 1041408   ;;  %vm1161_vm2 = vcmask 1043456  }
 0x398   :  { %v746_v51 = vsub.f32 1.0, %v745_v38  ;;  %vm766_vm7 = vmor %vm764_vm6, %vm765_vm5 }
 0x399   :  { %v761_v11 = vsub.f32 1.0, %v760_v26 }
 0x39a   :  { %v747_v17 = vmul.f32 %v1292_v30, %v746_v51 }
 0x39b   :  { %v762_v6 = vmul.f32 %v1294_v13, %v761_v11 }
 0x39c   :  { %v748_v22 = vadd.f32 %v1292_v30, %v747_v17  ;;  %v1170_v17 = vld [vmem:[%s2232_s5 + $0x10] sm:$0xff] }
 0x39d   :  { %v763_v23 = vadd.f32 %v1294_v13, %v762_v6 }
 0x39e   :  { %v752_v31 = vsel %vm751_vm3, %v1292_v30, %v748_v22  ;;  %v2172_v22 = vld [vmem:[%s2231_s4] ss:$0 sm:$0xff]  ;;  %vm1163_vm3 = vcmask 1045504  }
 0x39f   :  { %v757_v33 = vsel %vm754_vm4, %v756_v27, %v752_v31  ;;  %v767_v47 = vsel %vm766_vm7, %v1294_v13, %v763_v23  ;;  %v1171_v13 = vld [vmem:[%s2232_s5 + $0x18] sm:$0xff]  ;;  %v1169_v31 = vld [vmem:[%s2232_s5 + $0x8] sm:$0xff]  ;;  %vm1211_vm4 = vcmask 56320  }
 0x3a0   :  { %v775_v49 = vmul.f32 %v774_v29, %v757_v33  ;;  %v772_v1 = vsel %vm769_vm8, %v771_v53, %v767_v47 }
 0x3a2   :  { %v776_v4 = vadd.f32 %v775_v49, %v2100_v46 }
 0x3a4   :  { %1295 = vtanh.f32 %v776_v4 }
 0x3aa   :  { %v1296_v61 = vpop.eup %1295 }
 0x3ab   :  { %v779_v35 = vrot.slane %v1296_v61, 2 }
 0x3ad   :  { %v781_v50 = vsub.f32 %v2022_v41, %v779_v35 }
 0x3af   :  { %v783_v34 = vrot.slane %v781_v50, 6 }
 0x3b1   :  { %v785_v3 = vmul.f32 %v783_v34, %v772_v1 }
 0x3b3   :  { %v2104_v7 = vadd.f32 %v1296_v61, %v785_v3 }
 0x3b5   :  { %803 = vmatmul.f32.vlgmr.msra.gmra.mxu2 %v2104_v7  ;;  %823 = vmatmul.f32.vlgmr.msra.gmra.mxu3 %v2104_v7 }
 0x3b6   :  { %843 = vmatmul.f32.vlgmr.msrb.gmra.mxu0 %v2104_v7  ;;  %1077 = vmatpush.msra.mxu2 %v2025_v55 }
 0x3b8   :  { %1078 = vmatpush.msra.mxu2 %v2030_v57 }
 0x3ba   :  { %1079 = vmatpush.msra.mxu2 %v2035_v58  ;;  %v1183_v58 = vld [vmem:[%s2232_s5 + $0x78] sm:$0xff] }
 0x3bb   :  { %1188 = vmatpush.msra.mxu3 %v1183_v58 }
 0x3bc   :  { %1080 = vmatpush.msra.mxu2 %v2040_v59  ;;  %v1182_v59 = vld [vmem:[%s2232_s5 + $0x70] sm:$0xff] }
 0x3bd   :  { %1189 = vmatpush.msra.mxu3 %v1182_v59 }
 0x3be   :  { %1081 = vmatpush.msra.mxu2 %v2045_v19 }
 0x3c0   :  { %1082 = vmatpush.msra.mxu2 %v2050_v37 }
 0x3c2   :  { %1083 = vmatpush.msra.mxu2 %v2055_v63  ;;  %v1181_v63 = vld [vmem:[%s2232_s5 + $0x68] sm:$0xff] }
 0x3c3   :  { %1190 = vmatpush.msra.mxu3 %v1181_v63 }
 0x3c4   :  { %1084 = vmatpush.msra.mxu2 %v2060_v16 }
 0x3c6   :  { %1085 = vmatpush.msra.mxu2 %v2065_v25 }
 0x3c8   :  { %1086 = vmatpush.msra.mxu2 %v2069_v28  ;;  %v1180_v28 = vld [vmem:[%s2232_s5 + $0x60] sm:$0xff] }
 0x3c9   :  { %1191 = vmatpush.msra.mxu3 %v1180_v28 }
 0x3ca   :  { %1087 = vmatpush.msra.mxu2 %v2073_v32 }
 0x3cc   :  { %1088 = vmatpush.msra.mxu2 %v2077_v36 }
 0x3ce   :  { %1089 = vmatpush.msra.mxu2 %v2081_v40  ;;  %v1179_v40 = vld [vmem:[%s2232_s5 + $0x58] sm:$0xff] }
 0x3cf   :  { %1192 = vmatpush.msra.mxu3 %v1179_v40 }
 0x3d0   :  { %1090 = vmatpush.msra.mxu2 %v2085_v43  ;;  %v1178_v43 = vld [vmem:[%s2232_s5 + $0x50] sm:$0xff] }
 0x3d1   :  { %1193 = vmatpush.msra.mxu3 %v1178_v43 }
 0x3d2   :  { %1091 = vmatpush.msra.mxu2 %v2088_v62  ;;  %v1177_v62 = vld [vmem:[%s2232_s5 + $0x48] sm:$0xff] }
 0x3d3   :  { %1194 = vmatpush.msra.mxu3 %v1177_v62 }
 0x3d4   :  { %1092 = vmatpush.msra.mxu2 %v2091_v60  ;;  %v1176_v60 = vld [vmem:[%s2232_s5 + $0x40] sm:$0xff] }
 0x3d5   :  { %1195 = vmatpush.msra.mxu3 %v1176_v60 }
 0x3d7   :  { %1196 = vmatpush.msra.mxu3 %v1175_v45 }
 0x3d9   :  { %1197 = vmatpush.msra.mxu3 %v1174_v15 }
 0x3db   :  { %1198 = vmatpush.msra.mxu3 %v1173_v21 }
 0x3dd   :  { %1199 = vmatpush.msra.mxu3 %v1172_v48 }
 0x3df   :  { %1200 = vmatpush.msra.mxu3 %v1171_v13 }
 0x3e1   :  { %1201 = vmatpush.msra.mxu3 %v1170_v17 }
 0x3e3   :  { %1202 = vmatpush.msra.mxu3 %v1169_v31 }
 0x3e5   :  { %1203 = vmatpush.msra.mxu3 %v1168_v44 }
 0x433   :  { %v844_v51 = vpop.f32.mrf.mxu0 }
 0x434   :  { %v893_v26 = vadd.f32 %v2172_v22, %v844_v51 }
 0x436   :  { %v895_v49 = vrot.slane %v893_v26, 6 }
 0x438   :  { %v804_v55 = vpop.f32.mrf.mxu2  ;;  %v824_v57 = vpop.f32.mrf.mxu3 }
 0x439   :  { %v849_v19 = vrot.slane %v804_v55, 6  ;;  %v850_v37 = vrot.slane %v824_v57, 6 }
 0x43b   :  { %v853_v16 = vadd.f32 %v849_v19, %v2293_v9  ;;  %v854_v25 = vadd.f32 %v850_v37, %v2292_v5  ;;  %v1160_v37 = vsel %vm1159_vm1, %v1808_v52, %v1868_v56  ;;  %v2198_v56 = vld [vmem:[%s2233_s6] ss:$0 sm:$0xff] }
 0x43c   :  { %v1162_v63 = vsel %vm1161_vm2, %v1160_v37, %v1924_v14 }
 0x43d   :  { %v1235_v32 = vmul.f32 -1.442695, %v853_v16  ;;  %v1236_v36 = vmul.f32 -1.442695, %v854_v25  ;;  %v1164_v16 = vsel %vm1163_vm3, %v1162_v63, %v2022_v41 }
 0x43f   :  { %1297 = vpow2.f32 %v1235_v32 }
 0x440   :  { %1299 = vpow2.f32 %v1236_v36 }
 0x445   :  { %v1298_v8 = vpop.eup %1297 }
 0x446   :  { %v1300_v10 = vpop.eup %1299  ;;  %v861_v2 = vadd.f32 1.0, %v1298_v8 }
 0x447   :  { %v862_v24 = vadd.f32 1.0, %v1300_v10 }
 0x448   :  { %1301 = vrcp.f32 %v861_v2  ;;  %v874_v18 = vand.u32 2147483648, %v861_v2  ;;  %v872_v29 = vand.u32 2147483647, %v861_v2  ;;  %vm868_vm10 = vweird.f32 %v861_v2 }
 0x449   :  { %1303 = vrcp.f32 %v862_v24  ;;  %v889_v47 = vand.u32 2147483648, %v862_v24  ;;  %vm883_vm14 = vweird.f32 %v862_v24  ;;  %v887_v50 = vand.u32 2147483647, %v862_v24 }
 0x44a   :  { %v875_v39 = vor.u32 1.1754944e-38, %v874_v18  ;;  %vm873_vm12 = vcmp.eq.f32.partialorder %v872_v29, 8.507059e+37 }
 0x44b   :  { %v890_v3 = vor.u32 1.1754944e-38, %v889_v47  ;;  %vm888_vm0 = vcmp.eq.f32.partialorder %v887_v50, 8.507059e+37 }
 0x44e   :  { %v1302_v30 = vpop.eup %1301 }
 0x44f   :  { %v864_v38 = vmul.f32 %v1302_v30, %v861_v2  ;;  %v1304_v20 = vpop.eup %1303  ;;  %vm869_vm9 = vweird.f32 %v1302_v30 }
 0x450   :  { %vm870_vm11 = vmor %vm868_vm10, %vm869_vm9  ;;  %v879_v42 = vmul.f32 %v1304_v20, %v862_v24  ;;  %vm884_vm13 = vweird.f32 %v1304_v20 }
 0x451   :  { %v865_v12 = vsub.f32 1.0, %v864_v38  ;;  %vm885_vm15 = vmor %vm883_vm14, %vm884_vm13 }
 0x452   :  { %v880_v23 = vsub.f32 1.0, %v879_v42 }
 0x453   :  { %v866_v27 = vmul.f32 %v1302_v30, %v865_v12 }
 0x454   :  { %v881_v54 = vmul.f32 %v1304_v20, %v880_v23 }
 0x455   :  { %v867_v33 = vadd.f32 %v1302_v30, %v866_v27 }
 0x456   :  { %v882_v0 = vadd.f32 %v1304_v20, %v881_v54 }
 0x457   :  { %v871_v11 = vsel %vm870_vm11, %v1302_v30, %v867_v33 }
 0x458   :  { %v876_v4 = vsel %vm873_vm12, %v875_v39, %v871_v11  ;;  %v886_v34 = vsel %vm885_vm15, %v1304_v20, %v882_v0 }
 0x459   :  { %v897_v6 = vmul.f32 %v895_v49, %v876_v4  ;;  %v891_v57 = vsel %vm888_vm0, %v890_v3, %v886_v34 }
 0x45b   :  { %v898_v61 = vadd.f32 %v897_v6, %v2100_v46 }
 0x45d   :  { %1305 = vtanh.f32 %v898_v61 }
 0x463   :  { %v1306_v35 = vpop.eup %1305 }
 0x464   :  { %v901_v53 = vrot.slane %v1306_v35, 2 }
 0x466   :  { %v903_v1 = vsub.f32 %v2104_v7, %v901_v53 }
 0x468   :  { %v905_v55 = vrot.slane %v903_v1, 6 }
 0x46a   :  { %v907_v58 = vmul.f32 %v905_v55, %v891_v57 }
 0x46c   :  { %v2183_v59 = vadd.f32 %v1306_v35, %v907_v58 }
 0x46e   :  { %v910_v19 = vrot.slane %v2183_v59, 2 }
 0x470   :  { %928 = vmatmul.f32.vlgmr.msrb.gmra.mxu1 %v910_v19  ;;  %948 = vmatmul.f32.vlgmr.msrb.gmra.mxu2 %v910_v19 }
 0x471   :  { %968 = vmatmul.f32.vlgmr.msrb.gmra.mxu3 %v910_v19 }
 0x479   :  { %1204 = vmatmul.f32.vlgmr.msra.gmra.mxu3 %v1164_v16 }
 0x4ed   :  { %v929_v25 = vpop.f32.mrf.mxu1 }
 0x4ee   :  { %v974_v28 = vrot.slane %v929_v25, 4 }
 0x4f0   :  { %v978_v32 = vadd.f32 %v974_v28, %v2293_v9 }
 0x4f2   :  { %v1237_v36 = vmul.f32 -1.442695, %v978_v32 }
 0x4f3   :  { %v949_v40 = vpop.f32.mrf.mxu2 }
 0x4f4   :  { %1307 = vpow2.f32 %v1237_v36  ;;  %v975_v43 = vrot.slane %v949_v40, 4  ;;  %v969_v62 = vpop.f32.mrf.mxu3 }
 0x4f5   :  { %v1018_v51 = vadd.f32 %v2172_v22, %v969_v62 }
 0x4f6   :  { %v979_v60 = vadd.f32 %v975_v43, %v2292_v5 }
 0x4f7   :  { %v1020_v26 = vrot.slane %v1018_v51, 4 }
 0x4f8   :  { %v1238_v8 = vmul.f32 -1.442695, %v979_v60 }
 0x4fa   :  { %v1308_v52 = vpop.eup %1307  ;;  %1309 = vpow2.f32 %v1238_v8 }
 0x4fb   :  { %v986_v14 = vadd.f32 1.0, %v1308_v52 }
 0x4fc   :  { %v1205_v41 = vpop.f32.mrf.mxu3 }
 0x4fd   :  { %1311 = vrcp.f32 %v986_v14  ;;  %v1206_v10 = vadd.f32 %v2198_v56, %v1205_v41  ;;  %v999_v48 = vand.u32 2147483648, %v986_v14  ;;  %v997_v38 = vand.u32 2147483647, %v986_v14 }
 0x4fe   :  { %vm993_vm6 = vweird.f32 %v986_v14 }
 0x4ff   :  { %1212 = vst.msk [vmem:[%s2234_s7] sm:$0xff] %vm1211_vm4, %v1206_v10  ;;  %v1000_v18 = vor.u32 1.1754944e-38, %v999_v48  ;;  %vm998_vm8 = vcmp.eq.f32.partialorder %v997_v38, 8.507059e+37 }
 0x500   :  { %v1310_v2 = vpop.eup %1309 }
 0x501   :  { %v987_v45 = vadd.f32 1.0, %v1310_v2 }
 0x503   :  { %v1312_v15 = vpop.eup %1311  ;;  %1313 = vrcp.f32 %v987_v45  ;;  %v1014_v49 = vand.u32 2147483648, %v987_v45  ;;  %vm1008_vm10 = vweird.f32 %v987_v45  ;;  %v1012_v4 = vand.u32 2147483647, %v987_v45 }
 0x504   :  { %v989_v24 = vmul.f32 %v1312_v15, %v986_v14  ;;  %vm994_vm5 = vweird.f32 %v1312_v15 }
 0x505   :  { %vm995_vm7 = vmor %vm993_vm6, %vm994_vm5  ;;  %v1015_v61 = vor.u32 1.1754944e-38, %v1014_v49  ;;  %vm1013_vm12 = vcmp.eq.f32.partialorder %v1012_v4, 8.507059e+37 }
 0x506   :  { %v990_v21 = vsub.f32 1.0, %v989_v24 }
 0x508   :  { %v991_v30 = vmul.f32 %v1312_v15, %v990_v21 }
 0x509   :  { %v1314_v12 = vpop.eup %1313 }
 0x50a   :  { %v992_v13 = vadd.f32 %v1312_v15, %v991_v30  ;;  %v1004_v17 = vmul.f32 %v1314_v12, %v987_v45  ;;  %vm1009_vm9 = vweird.f32 %v1314_v12 }
 0x50b   :  { %vm1010_vm11 = vmor %vm1008_vm10, %vm1009_vm9 }
 0x50c   :  { %v996_v20 = vsel %vm995_vm7, %v1312_v15, %v992_v13  ;;  %v1005_v31 = vsub.f32 1.0, %v1004_v17 }
 0x50d   :  { %v1001_v27 = vsel %vm998_vm8, %v1000_v18, %v996_v20 }
 0x50e   :  { %v1022_v29 = vmul.f32 %v1020_v26, %v1001_v27  ;;  %v1006_v44 = vmul.f32 %v1314_v12, %v1005_v31 }
 0x510   :  { %v1023_v33 = vadd.f32 %v1022_v29, %v2100_v46  ;;  %v1007_v39 = vadd.f32 %v1314_v12, %v1006_v44 }
 0x512   :  { %1315 = vtanh.f32 %v1023_v33  ;;  %v1011_v23 = vsel %vm1010_vm11, %v1314_v12, %v1007_v39 }
 0x513   :  { %v1016_v0 = vsel %vm1013_vm12, %v1015_v61, %v1011_v23 }
 0x518   :  { %v1316_v42 = vpop.eup %1315 }
 0x519   :  { %v1026_v11 = vrot.slane %v1316_v42, 2 }
 0x51b   :  { %v1028_v6 = vsub.f32 %v2183_v59, %v1026_v11 }
 0x51d   :  { %v1030_v54 = vrot.slane %v1028_v6, 6 }
 0x51f   :  { %v1032_v35 = vmul.f32 %v1030_v54, %v1016_v0 }
 0x521   :  { %v2208_v47 = vadd.f32 %v1316_v42, %v1032_v35 }
 0x523   :  { %v1035_v50 = vrot.slane %v2208_v47, 4 }
 0x525   :  { %1053 = vmatmul.f32.vlgmr.msra.gmra.mxu0 %v1035_v50  ;;  %1073 = vmatmul.f32.vlgmr.msra.gmra.mxu1 %v1035_v50 }
 0x526   :  { %1093 = vmatmul.f32.vlgmr.msra.gmra.mxu2 %v1035_v50 }
 0x5a2   :  { %v1054_v53 = vpop.f32.mrf.mxu0  ;;  %v1074_v34 = vpop.f32.mrf.mxu1 }
 0x5a3   :  { %v1099_v1 = vrot.slane %v1054_v53, 2  ;;  %v1100_v3 = vrot.slane %v1074_v34, 2 }
 0x5a5   :  { %v1103_v55 = vadd.f32 %v1099_v1, %v2293_v9  ;;  %v1104_v57 = vadd.f32 %v1100_v3, %v2292_v5 }
 0x5a7   :  { %v1239_v58 = vmul.f32 -1.442695, %v1103_v55  ;;  %v1240_v19 = vmul.f32 -1.442695, %v1104_v57 }
 0x5a9   :  { %1317 = vpow2.f32 %v1239_v58  ;;  %v1094_v36 = vpop.f32.mrf.mxu2 }
 0x5aa   :  { %1319 = vpow2.f32 %v1240_v19  ;;  %v1143_v5 = vadd.f32 %v2172_v22, %v1094_v36 }
 0x5ac   :  { %v1145_v10 = vrot.slane %v1143_v5, 2 }
 0x5af   :  { %v1318_v37 = vpop.eup %1317 }
 0x5b0   :  { %v1320_v63 = vpop.eup %1319  ;;  %v1111_v16 = vadd.f32 1.0, %v1318_v37 }
 0x5b1   :  { %v1112_v25 = vadd.f32 1.0, %v1320_v63 }
 0x5b2   :  { %1321 = vrcp.f32 %v1111_v16  ;;  %v1124_v43 = vand.u32 2147483648, %v1111_v16  ;;  %v1122_v9 = vand.u32 2147483647, %v1111_v16  ;;  %vm1118_vm14 = vweird.f32 %v1111_v16 }
 0x5b3   :  { %1323 = vrcp.f32 %v1112_v25  ;;  %v1139_v38 = vand.u32 2147483648, %v1112_v25  ;;  %vm1133_vm6 = vweird.f32 %v1112_v25  ;;  %v1137_v22 = vand.u32 2147483647, %v1112_v25 }
 0x5b4   :  { %v1125_v14 = vor.u32 1.1754944e-38, %v1124_v43  ;;  %vm1123_vm0 = vcmp.eq.f32.partialorder %v1122_v9, 8.507059e+37 }
 0x5b5   :  { %v1140_v17 = vor.u32 1.1754944e-38, %v1139_v38  ;;  %vm1138_vm8 = vcmp.eq.f32.partialorder %v1137_v22, 8.507059e+37 }
 0x5b8   :  { %v1322_v28 = vpop.eup %1321 }
 0x5b9   :  { %v1114_v32 = vmul.f32 %v1322_v28, %v1111_v16  ;;  %v1324_v62 = vpop.eup %1323  ;;  %vm1119_vm13 = vweird.f32 %v1322_v28 }
 0x5ba   :  { %v1129_v52 = vmul.f32 %v1324_v62, %v1112_v25  ;;  %vm1120_vm15 = vmor %vm1118_vm14, %vm1119_vm13  ;;  %vm1134_vm5 = vweird.f32 %v1324_v62 }
 0x5bb   :  { %v1115_v40 = vsub.f32 1.0, %v1114_v32  ;;  %vm1135_vm7 = vmor %vm1133_vm6, %vm1134_vm5 }
 0x5bc   :  { %v1130_v15 = vsub.f32 1.0, %v1129_v52 }
 0x5bd   :  { %v1116_v60 = vmul.f32 %v1322_v28, %v1115_v40 }
 0x5be   :  { %v1131_v21 = vmul.f32 %v1324_v62, %v1130_v15 }
 0x5bf   :  { %v1117_v8 = vadd.f32 %v1322_v28, %v1116_v60 }
 0x5c0   :  { %v1132_v48 = vadd.f32 %v1324_v62, %v1131_v21 }
 0x5c1   :  { %v1121_v41 = vsel %vm1120_vm15, %v1322_v28, %v1117_v8 }
 0x5c2   :  { %v1126_v2 = vsel %vm1123_vm0, %v1125_v14, %v1121_v41  ;;  %v1136_v12 = vsel %vm1135_vm7, %v1324_v62, %v1132_v48 }
 0x5c3   :  { %v1147_v45 = vmul.f32 %v1145_v10, %v1126_v2  ;;  %v1141_v20 = vsel %vm1138_vm8, %v1140_v17, %v1136_v12 }
 0x5c5   :  { %v1148_v24 = vadd.f32 %v1147_v45, %v2100_v46  ;;  %v1165_v46 = vsel %vm1159_vm1, %v2104_v7, %v2183_v59 }
 0x5c6   :  { %v1166_v29 = vsel %vm1161_vm2, %v1165_v46, %v2208_v47 }
 0x5c7   :  { %1325 = vtanh.f32 %v1148_v24 }
 0x5cd   :  { %v1326_v30 = vpop.eup %1325 }
 0x5ce   :  { %v1151_v51 = vrot.slane %v1326_v30, 2 }
 0x5d0   :  { %v1153_v13 = vsub.f32 %v2208_v47, %v1151_v51 }
 0x5d2   :  { %v1155_v18 = vrot.slane %v1153_v13, 6 }
 0x5d4   :  { %v1157_v26 = vmul.f32 %v1155_v18, %v1141_v20 }
 0x5d6   :  { %v1158_v27 = vadd.f32 %v1326_v30, %v1157_v26 }
 0x5d8   :  { %v1167_v31 = vsel %vm1163_vm3, %v1166_v29, %v1158_v27 }
 0x5d9   :  { %1207 = vmatmul.f32.gmra.mxu3 %v1167_v31 }
 0x65c   :  { %v1208_v33 = vpop.f32.mrf.mxu3 }
 0x65d   :  { %v1209_v44 = vadd.f32 %v2198_v56, %v1208_v33 }
 0x65f   :  { %1213 = vst.msk [vmem:[%s2234_s7 + $0x8] sm:$0xff] %vm1211_vm4, %v1209_v44 }
 0x660   :  { %1218 = vsyncpa [#allocation3], 1 }

</bundles_post_ra>
